<compile_context>
chip_gen: v5e
topology: v5e:2x2
jax: 0.10.0
libtpu: 0.0.40
codegen_flags: <defaults>
</compile_context>

<pallas_src>
import math

import jax
import jax.numpy as jnp
import numpy as np
from jax.experimental import pallas as pl
from jax.experimental.pallas import tpu as pltpu

EPS_STD = 1e-5


def spk_encoder_kernel(x_ref, wcat_ref, b1_ref, w2_ref, b2_ref, s2_ref, t2_ref,
                       wet_ref, be_ref, out_ref):
    F, BT = x_ref.shape
    B, E = out_ref.shape
    T = BT // B
    mxu_dt = wcat_ref.dtype

    x = x_ref[...].astype(jnp.float32)                      # (F, B*T)
    zcol = jnp.zeros((F, 1), jnp.float32)

    # ---- feat_layer: per-utterance cepstral mean normalization over time ----
    # TODO(synk): FeatureExtractionLayer internals are factory-injected; CMN is
    # used as a representative normalization (spec_aug=False).
    cur, prv, nxt = [], [], []
    for b in range(B):                                      # static unroll, B is small
        xb = x[:, b * T:(b + 1) * T]                        # (F, T)
        xb = xb - jnp.mean(xb, axis=1, keepdims=True)       # CMN
        cur.append(xb)
        # zero-padded k=3 neighbourhoods (per utterance, so no cross-batch leak)
        prv.append(jnp.concatenate([zcol, xb[:, :T - 1]], axis=1))   # x[:, t-1]
        nxt.append(jnp.concatenate([xb[:, 1:], zcol], axis=1))       # x[:, t+1]

    # ---- frame_layer block 1: Conv1d(F->C1, k=3, pad=1) + ReLU (BN1 folded) ----
    # One fused K=3F matmul: [x(t-1); x(t); x(t+1)] stacked along sublanes.
    x_stack = jnp.concatenate(
        [jnp.concatenate(prv, axis=1),
         jnp.concatenate(cur, axis=1),
         jnp.concatenate(nxt, axis=1)], axis=0)             # (3F, B*T)

    y = jnp.dot(wcat_ref[...], x_stack.astype(mxu_dt),
                preferred_element_type=jnp.float32) + b1_ref[...]
    y = jnp.maximum(y, 0.0)                                 # (C1, B*T); BN1 folded into w2/b2

    # ---- frame_layer block 2: Conv1d(C1->C2, k=1) + ReLU + BN2 affine ----
    y = jnp.dot(w2_ref[...], y.astype(mxu_dt),
                preferred_element_type=jnp.float32) + b2_ref[...]
    y = jnp.maximum(y, 0.0)
    y = y * s2_ref[...] + t2_ref[...]                       # (C2, B*T)

    # ---- pool_layer: per-utterance statistics pooling (mean ++ std) ----
    cols = []
    for b in range(B):
        yb = y[:, b * T:(b + 1) * T]                        # (C2, T)
        m = jnp.mean(yb, axis=1, keepdims=True)             # (C2, 1)
        msq = jnp.mean(yb * yb, axis=1, keepdims=True)
        var = jnp.maximum(msq - m * m, 0.0)                 # one-pass variance, clamped
        std = jnp.sqrt(var + EPS_STD)
        cols.append(jnp.concatenate([m, std], axis=0))      # (2*C2, 1)
    pooled = jnp.concatenate(cols, axis=1)                  # (2*C2, B)

    # ---- emb_layer: Linear(2*C2 -> E); pooling-BN and emb-BN folded host-side ----
    pooled_t = jnp.transpose(pooled)                        # (B, 2*C2): one small XLU transpose
    e = jnp.dot(pooled_t, wet_ref[...],
                preferred_element_type=jnp.float32) + be_ref[...]    # (B, E), lane-dense
    out_ref[...] = e.astype(out_ref.dtype)


def spk_encoder(x, params, *, mxu_dtype=jnp.bfloat16):
    """x: (B, F, T) channel-major features. Returns (B, E) embeddings."""
    wtaps, b1, s1, t1, w2, b2, s2, t2, sp, tp, we, be, se, te = params
    B, F, T = x.shape
    E = we.shape[0]

    # --- host-side parameter prep (cheap, exact algebra) ---
    # 1) fuse the three k=3 conv taps into a single (C1, 3F) matrix (K = 3F).
    wcat = jnp.concatenate([wtaps[0], wtaps[1], wtaps[2]], axis=1)
    # 2) fold BN1 (post-ReLU affine) into the k=1 conv:  w2' = w2*s1^T, b2' = w2@t1 + b2
    w2f = w2 * s1[:, 0][None, :]
    b2f = jnp.dot(w2, t1) + b2
    # 3) fold pooling-BN (sp,tp) and embedding-BN (se,te) into the final linear.
    wef = (se * we) * sp[:, 0][None, :]                     # (E, 2*C2)
    bef = se * (jnp.dot(we, tp) + be) + te                  # (E, 1)
    wet = wef.T                                             # (2*C2, E) -> lane-dense output
    be_row = bef.T                                          # (1, E)

    # layout plumbing: (B, F, T) -> (F, B*T), time contiguous per utterance.
    x2 = jnp.transpose(x, (1, 0, 2)).reshape(F, B * T)

    vmem = pl.BlockSpec(memory_space=pltpu.MemorySpace.VMEM)
    out = pl.pallas_call(
        spk_encoder_kernel,
        out_shape=jax.ShapeDtypeStruct((B, E), jnp.float32),
        in_specs=[vmem] * 9,
        out_specs=vmem,
    )(x2,
      wcat.astype(mxu_dtype), b1,
      w2f.astype(mxu_dtype), b2f, s2, t2,
      wet.astype(jnp.float32), be_row)
    return out                                              # (B, E)


def spk_encoder_ref(x, params):
    """Pure-JAX f32 reference with the original (unfolded) module semantics."""
    wtaps, b1, s1, t1, w2, b2, s2, t2, sp, tp, we, be, se, te = params
    x = x - jnp.mean(x, axis=-1, keepdims=True)
    xp = jnp.pad(x, ((0, 0), (0, 0), (1, 1)))
    y = (jnp.einsum('cf,bft->bct', wtaps[0], xp[:, :, :-2])
         + jnp.einsum('cf,bft->bct', wtaps[1], xp[:, :, 1:-1])
         + jnp.einsum('cf,bft->bct', wtaps[2], xp[:, :, 2:])
         + b1[None])
    y = jnp.maximum(y, 0.0)
    y = y * s1[None] + t1[None]
    y = jnp.einsum('dc,bct->bdt', w2, y) + b2[None]
    y = jnp.maximum(y, 0.0)
    y = y * s2[None] + t2[None]
    mean = jnp.mean(y, axis=-1, keepdims=True)
    var = jnp.mean((y - mean) ** 2, axis=-1, keepdims=True)
    std = jnp.sqrt(var + EPS_STD)
    pooled = jnp.concatenate([mean, std], axis=1)           # (B, 2*C2, 1)
    pooled = pooled * sp[None] + tp[None]
    e = jnp.einsum('ed,bdo->beo', we, pooled) + be[None]
    e = e * se[None] + te[None]
    return e[:, :, 0]


if __name__ == "__main__":
    B, F, T = 2, 80, 128       # batch, input_dim (module default 80), frames
    C1, C2, E = 64, 64, 128    # frame-layer channels, embedding dim
    f32 = jnp.float32

    key = jax.random.PRNGKey(0)
    ks = jax.random.split(key, 16)

    # Deterministic synthetic parameters (BN running stats: mean=0, var=1; folded below).
    bn_eps = 1e-5

    def bn_fold(kg, kb, dim):
        gamma = 1.0 + 0.1 * jax.random.normal(kg, (dim, 1), f32)
        beta = 0.05 * jax.random.normal(kb, (dim, 1), f32)
        scale = gamma / jnp.sqrt(1.0 + bn_eps)
        shift = beta
        return scale, shift

    wtaps = jax.random.normal(ks[0], (3, C1, F), f32) / math.sqrt(3 * F)
    b1 = 0.01 * jax.random.normal(ks[1], (C1, 1), f32)
    s1, t1 = bn_fold(ks[2], ks[3], C1)
    w2 = jax.random.normal(ks[4], (C2, C1), f32) / math.sqrt(C1)
    b2 = 0.01 * jax.random.normal(ks[5], (C2, 1), f32)
    s2, t2 = bn_fold(ks[6], ks[7], C2)
    sp, tp = bn_fold(ks[8], ks[9], 2 * C2)
    we = jax.random.normal(ks[10], (E, 2 * C2), f32) / math.sqrt(2 * C2)
    be = 0.01 * jax.random.normal(ks[11], (E, 1), f32)
    se, te = bn_fold(ks[12], ks[13], E)

    params = (wtaps, b1, s1, t1, w2, b2, s2, t2, sp, tp, we, be, se, te)
    x = jax.random.normal(ks[14], (B, F, T), f32)

    out = jax.block_until_ready(jax.jit(spk_encoder)(x, params))
    ref = jax.block_until_ready(spk_encoder_ref(x, params))

    assert out.shape == (B, E), out.shape
    if not np.allclose(np.asarray(out), np.asarray(ref), rtol=5e-2, atol=5e-2):
        raise AssertionError(
            "mismatch vs reference, max abs diff="
            f"{np.max(np.abs(np.asarray(out) - np.asarray(ref)))}")
    print("KERNEL_OK")
</pallas_src>

<mosaic_0001>
module attributes {stable_mosaic.version = 11 : i64} {
  func.func @spk_encoder_kernel(%arg0: memref<80x256xf32, #tpu.memory_space<vmem>>, %arg1: memref<64x240xbf16, #tpu.memory_space<vmem>>, %arg2: memref<64x1xf32, #tpu.memory_space<vmem>>, %arg3: memref<64x64xbf16, #tpu.memory_space<vmem>>, %arg4: memref<64x1xf32, #tpu.memory_space<vmem>>, %arg5: memref<64x1xf32, #tpu.memory_space<vmem>>, %arg6: memref<64x1xf32, #tpu.memory_space<vmem>>, %arg7: memref<128x128xf32, #tpu.memory_space<vmem>>, %arg8: memref<1x128xf32, #tpu.memory_space<vmem>>, %arg9: memref<2x128xf32, #tpu.memory_space<vmem>>) attributes {dimension_semantics = [], scalar_prefetch = 0 : i64, scratch_operands = 0 : i64, tpu.core_type = #tpu.core_type<tc>} {
    %c0 = arith.constant 0 : index
    %c0_0 = arith.constant 0 : index
    %0 = vector.load %arg0[%c0, %c0_0] : memref<80x256xf32, #tpu.memory_space<vmem>>, vector<80x256xf32>
    %cst = arith.constant 0.000000e+00 : f32
    %1 = vector.broadcast %cst : f32 to vector<80x1xf32>
    %2 = vector.extract_strided_slice %0 {offsets = [0, 0], sizes = [80, 128], strides = [1, 1]} : vector<80x256xf32> to vector<80x128xf32>
    %cst_1 = arith.constant dense<0.000000e+00> : vector<80xf32>
    %3 = vector.multi_reduction <add>, %2, %cst_1 [1] : vector<80x128xf32> to vector<80xf32>
    %4 = vector.shape_cast %3 : vector<80xf32> to vector<80x1xf32>
    %cst_2 = arith.constant 1.280000e+02 : f32
    %5 = vector.broadcast %cst_2 : f32 to vector<80x1xf32>
    %6 = arith.divf %4, %5 : vector<80x1xf32>
    %7 = vector.broadcast %6 : vector<80x1xf32> to vector<80x128xf32>
    %8 = arith.subf %2, %7 : vector<80x128xf32>
    %9 = vector.extract_strided_slice %8 {offsets = [0, 0], sizes = [80, 127], strides = [1, 1]} : vector<80x128xf32> to vector<80x127xf32>
    %10 = tpu.concatenate %1, %9 in 1 : vector<80x1xf32>, vector<80x127xf32> -> vector<80x128xf32>
    %11 = vector.extract_strided_slice %8 {offsets = [0, 1], sizes = [80, 127], strides = [1, 1]} : vector<80x128xf32> to vector<80x127xf32>
    %12 = tpu.concatenate %11, %1 in 1 : vector<80x127xf32>, vector<80x1xf32> -> vector<80x128xf32>
    %13 = vector.extract_strided_slice %0 {offsets = [0, 128], sizes = [80, 128], strides = [1, 1]} : vector<80x256xf32> to vector<80x128xf32>
    %cst_3 = arith.constant dense<0.000000e+00> : vector<80xf32>
    %14 = vector.multi_reduction <add>, %13, %cst_3 [1] : vector<80x128xf32> to vector<80xf32>
    %15 = vector.shape_cast %14 : vector<80xf32> to vector<80x1xf32>
    %cst_4 = arith.constant 1.280000e+02 : f32
    %16 = vector.broadcast %cst_4 : f32 to vector<80x1xf32>
    %17 = arith.divf %15, %16 : vector<80x1xf32>
    %18 = vector.broadcast %17 : vector<80x1xf32> to vector<80x128xf32>
    %19 = arith.subf %13, %18 : vector<80x128xf32>
    %20 = vector.extract_strided_slice %19 {offsets = [0, 0], sizes = [80, 127], strides = [1, 1]} : vector<80x128xf32> to vector<80x127xf32>
    %21 = tpu.concatenate %1, %20 in 1 : vector<80x1xf32>, vector<80x127xf32> -> vector<80x128xf32>
    %22 = vector.extract_strided_slice %19 {offsets = [0, 1], sizes = [80, 127], strides = [1, 1]} : vector<80x128xf32> to vector<80x127xf32>
    %23 = tpu.concatenate %22, %1 in 1 : vector<80x127xf32>, vector<80x1xf32> -> vector<80x128xf32>
    %24 = tpu.concatenate %10, %21 in 1 : vector<80x128xf32>, vector<80x128xf32> -> vector<80x256xf32>
    %25 = tpu.concatenate %8, %19 in 1 : vector<80x128xf32>, vector<80x128xf32> -> vector<80x256xf32>
    %26 = tpu.concatenate %12, %23 in 1 : vector<80x128xf32>, vector<80x128xf32> -> vector<80x256xf32>
    %27 = tpu.concatenate %24, %25, %26 in 0 : vector<80x256xf32>, vector<80x256xf32>, vector<80x256xf32> -> vector<240x256xf32>
    %c0_5 = arith.constant 0 : index
    %c0_6 = arith.constant 0 : index
    %28 = vector.load %arg1[%c0_5, %c0_6] : memref<64x240xbf16, #tpu.memory_space<vmem>>, vector<64x240xbf16>
    %29 = arith.truncf %27 : vector<240x256xf32> to vector<240x256xbf16>
    %cst_7 = arith.constant dense<0.000000e+00> : vector<64x256xf32>
    %30 = tpu.matmul %28, %29, %cst_7 {dimension_numbers = #tpu.dot_dimension_numbers<[1], [0], [0], [1], [0, 0, 1, 1], [], []>} : vector<64x240xbf16>, vector<240x256xbf16>, vector<64x256xf32> -> vector<64x256xf32>
    %c0_8 = arith.constant 0 : index
    %c0_9 = arith.constant 0 : index
    %31 = vector.load %arg2[%c0_8, %c0_9] : memref<64x1xf32, #tpu.memory_space<vmem>>, vector<64x1xf32>
    %32 = vector.broadcast %31 : vector<64x1xf32> to vector<64x256xf32>
    %33 = arith.addf %30, %32 : vector<64x256xf32>
    %cst_10 = arith.constant 0.000000e+00 : f32
    %34 = vector.broadcast %cst_10 : f32 to vector<64x256xf32>
    %35 = arith.maximumf %33, %34 : vector<64x256xf32>
    %c0_11 = arith.constant 0 : index
    %c0_12 = arith.constant 0 : index
    %36 = vector.load %arg3[%c0_11, %c0_12] : memref<64x64xbf16, #tpu.memory_space<vmem>>, vector<64x64xbf16>
    %37 = arith.truncf %35 : vector<64x256xf32> to vector<64x256xbf16>
    %cst_13 = arith.constant dense<0.000000e+00> : vector<64x256xf32>
    %38 = tpu.matmul %36, %37, %cst_13 {dimension_numbers = #tpu.dot_dimension_numbers<[1], [0], [0], [1], [0, 0, 1, 1], [], []>} : vector<64x64xbf16>, vector<64x256xbf16>, vector<64x256xf32> -> vector<64x256xf32>
    %c0_14 = arith.constant 0 : index
    %c0_15 = arith.constant 0 : index
    %39 = vector.load %arg4[%c0_14, %c0_15] : memref<64x1xf32, #tpu.memory_space<vmem>>, vector<64x1xf32>
    %40 = vector.broadcast %39 : vector<64x1xf32> to vector<64x256xf32>
    %41 = arith.addf %38, %40 : vector<64x256xf32>
    %cst_16 = arith.constant 0.000000e+00 : f32
    %42 = vector.broadcast %cst_16 : f32 to vector<64x256xf32>
    %43 = arith.maximumf %41, %42 : vector<64x256xf32>
    %c0_17 = arith.constant 0 : index
    %c0_18 = arith.constant 0 : index
    %44 = vector.load %arg5[%c0_17, %c0_18] : memref<64x1xf32, #tpu.memory_space<vmem>>, vector<64x1xf32>
    %45 = vector.broadcast %44 : vector<64x1xf32> to vector<64x256xf32>
    %46 = arith.mulf %43, %45 : vector<64x256xf32>
    %c0_19 = arith.constant 0 : index
    %c0_20 = arith.constant 0 : index
    %47 = vector.load %arg6[%c0_19, %c0_20] : memref<64x1xf32, #tpu.memory_space<vmem>>, vector<64x1xf32>
    %48 = vector.broadcast %47 : vector<64x1xf32> to vector<64x256xf32>
    %49 = arith.addf %46, %48 : vector<64x256xf32>
    %50 = vector.extract_strided_slice %49 {offsets = [0, 0], sizes = [64, 128], strides = [1, 1]} : vector<64x256xf32> to vector<64x128xf32>
    %cst_21 = arith.constant dense<0.000000e+00> : vector<64xf32>
    %51 = vector.multi_reduction <add>, %50, %cst_21 [1] : vector<64x128xf32> to vector<64xf32>
    %52 = vector.shape_cast %51 : vector<64xf32> to vector<64x1xf32>
    %cst_22 = arith.constant 1.280000e+02 : f32
    %53 = vector.broadcast %cst_22 : f32 to vector<64x1xf32>
    %54 = arith.divf %52, %53 : vector<64x1xf32>
    %55 = arith.mulf %50, %50 : vector<64x128xf32>
    %cst_23 = arith.constant dense<0.000000e+00> : vector<64xf32>
    %56 = vector.multi_reduction <add>, %55, %cst_23 [1] : vector<64x128xf32> to vector<64xf32>
    %57 = vector.shape_cast %56 : vector<64xf32> to vector<64x1xf32>
    %cst_24 = arith.constant 1.280000e+02 : f32
    %58 = vector.broadcast %cst_24 : f32 to vector<64x1xf32>
    %59 = arith.divf %57, %58 : vector<64x1xf32>
    %60 = arith.mulf %54, %54 : vector<64x1xf32>
    %61 = arith.subf %59, %60 : vector<64x1xf32>
    %cst_25 = arith.constant 0.000000e+00 : f32
    %62 = vector.broadcast %cst_25 : f32 to vector<64x1xf32>
    %63 = arith.maximumf %61, %62 : vector<64x1xf32>
    %cst_26 = arith.constant 9.99999974E-6 : f32
    %64 = vector.broadcast %cst_26 : f32 to vector<64x1xf32>
    %65 = arith.addf %63, %64 : vector<64x1xf32>
    %66 = math.sqrt %65 : vector<64x1xf32>
    %67 = tpu.concatenate %54, %66 in 0 : vector<64x1xf32>, vector<64x1xf32> -> vector<128x1xf32>
    %68 = vector.extract_strided_slice %49 {offsets = [0, 128], sizes = [64, 128], strides = [1, 1]} : vector<64x256xf32> to vector<64x128xf32>
    %cst_27 = arith.constant dense<0.000000e+00> : vector<64xf32>
    %69 = vector.multi_reduction <add>, %68, %cst_27 [1] : vector<64x128xf32> to vector<64xf32>
    %70 = vector.shape_cast %69 : vector<64xf32> to vector<64x1xf32>
    %cst_28 = arith.constant 1.280000e+02 : f32
    %71 = vector.broadcast %cst_28 : f32 to vector<64x1xf32>
    %72 = arith.divf %70, %71 : vector<64x1xf32>
    %73 = arith.mulf %68, %68 : vector<64x128xf32>
    %cst_29 = arith.constant dense<0.000000e+00> : vector<64xf32>
    %74 = vector.multi_reduction <add>, %73, %cst_29 [1] : vector<64x128xf32> to vector<64xf32>
    %75 = vector.shape_cast %74 : vector<64xf32> to vector<64x1xf32>
    %cst_30 = arith.constant 1.280000e+02 : f32
    %76 = vector.broadcast %cst_30 : f32 to vector<64x1xf32>
    %77 = arith.divf %75, %76 : vector<64x1xf32>
    %78 = arith.mulf %72, %72 : vector<64x1xf32>
    %79 = arith.subf %77, %78 : vector<64x1xf32>
    %cst_31 = arith.constant 0.000000e+00 : f32
    %80 = vector.broadcast %cst_31 : f32 to vector<64x1xf32>
    %81 = arith.maximumf %79, %80 : vector<64x1xf32>
    %cst_32 = arith.constant 9.99999974E-6 : f32
    %82 = vector.broadcast %cst_32 : f32 to vector<64x1xf32>
    %83 = arith.addf %81, %82 : vector<64x1xf32>
    %84 = math.sqrt %83 : vector<64x1xf32>
    %85 = tpu.concatenate %72, %84 in 0 : vector<64x1xf32>, vector<64x1xf32> -> vector<128x1xf32>
    %86 = tpu.concatenate %67, %85 in 1 : vector<128x1xf32>, vector<128x1xf32> -> vector<128x2xf32>
    %87 = tpu.transpose %86, [1, 0] : vector<128x2xf32> -> vector<2x128xf32>
    %c0_33 = arith.constant 0 : index
    %c0_34 = arith.constant 0 : index
    %88 = vector.load %arg7[%c0_33, %c0_34] : memref<128x128xf32, #tpu.memory_space<vmem>>, vector<128x128xf32>
    %cst_35 = arith.constant dense<0.000000e+00> : vector<2x128xf32>
    %89 = tpu.matmul %87, %88, %cst_35 {dimension_numbers = #tpu.dot_dimension_numbers<[1], [0], [0], [1], [0, 0, 1, 1], [], []>} : vector<2x128xf32>, vector<128x128xf32>, vector<2x128xf32> -> vector<2x128xf32>
    %c0_36 = arith.constant 0 : index
    %c0_37 = arith.constant 0 : index
    %90 = vector.load %arg8[%c0_36, %c0_37] : memref<1x128xf32, #tpu.memory_space<vmem>>, vector<1x128xf32>
    %91 = vector.broadcast %90 : vector<1x128xf32> to vector<2x128xf32>
    %92 = arith.addf %89, %91 : vector<2x128xf32>
    %c0_38 = arith.constant 0 : index
    %c0_39 = arith.constant 0 : index
    %93 = vector.load %arg9[%c0_38, %c0_39] : memref<2x128xf32, #tpu.memory_space<vmem>>, vector<2x128xf32>
    tpu.vector_store %arg9[%c0_38, %c0_39], %92 {strides = array<i32>} : memref<2x128xf32, #tpu.memory_space<vmem>>, vector<2x128xf32>,
    return
  }
}

</mosaic_0001>

<bundles_post_ra>
// kernel: spk_encoder.1
= control target key start
LH: loop header
LB: loop body
LE: loop exit
PB: predicated region body
PF: predicated region fallthrough
CT: control target
= control target key end

     0   :  { %s2876_s0 = inlined_call_operand.vmem [shape: f32[80,256], index: 0, kind: input, shape index: {}]   ;;  %s2877_s1 = inlined_call_operand.vmem [shape: bf16[64,240], index: 1, kind: input, shape index: {}]   ;;  %s2878_s2 = inlined_call_operand.vmem [shape: f32[64,1], index: 2, kind: input, shape index: {}]   ;;  %s2879_s3 = inlined_call_operand.vmem [shape: bf16[64,64], index: 3, kind: input, shape index: {}]   ;;  %s2880_s4 = inlined_call_operand.vmem [shape: f32[64,1], index: 4, kind: input, shape index: {}]   ;;  %s2881_s5 = inlined_call_operand.vmem [shape: f32[64,1], index: 5, kind: input, shape index: {}]   ;;  %s2882_s6 = inlined_call_operand.vmem [shape: f32[64,1], index: 6, kind: input, shape index: {}]   ;;  %s2883_s7 = inlined_call_operand.vmem [shape: f32[128,128], index: 7, kind: input, shape index: {}]   ;;  %s2884_s8 = inlined_call_operand.vmem [shape: f32[1,128], index: 8, kind: input, shape index: {}]   ;;  %s2885_s9 = inlined_call_operand.hbm [shape: f32[2,128], index: 9, kind: output, shape index: {}]  }
   0x1   :  { %v50_v0 = vld [vmem:[%s2876_s0 + $0x80] sm:$0xff] }
   0x2   :  { %v46_v1 = vld [vmem:[%s2876_s0 + $0x60] sm:$0xff]  ;;  %70 = vadd.xlane.f32.xlu0 %v50_v0 }
   0x3   :  { %v42_v2 = vld [vmem:[%s2876_s0 + $0x40] sm:$0xff]  ;;  %66 = vadd.xlane.f32.xlu1 %v46_v1 }
   0x4   :  { %62 = vadd.xlane.f32.xlu2 %v42_v2 }
   0x5   :  { %14 = vsyncpa [#allocation3], 0  ;;  %v52_v3 = vld [vmem:[%s2876_s0 + $0x90] sm:$0xff]  ;;  %v1882_v7 = vld [vmem:[%s2876_s0 + $0x20] sm:$0xff]  ;;  %v1800_v18 = vmov 128.0   ;;  %s1801_s24 = smov 127  }
   0x6   :  { %v48_v4 = vld [vmem:[%s2876_s0 + $0x70] sm:$0xff]  ;;  %v1887_v8 = vld [vmem:[%s2876_s0] sm:$0xff]  ;;  %v1900_v10 = vld [vmem:[%s2876_s0 + $0x88] sm:$0xff]  ;;  %1740 = vrcp.f32 %v1800_v18  ;;  %s1802_s25 = smov 1   ;;  %vm182_vm1 = vcmask 1039360   ;;  %vm445_vm3 = vcmask 916480  }
   0x7   :  { %v44_v5 = vld [vmem:[%s2876_s0 + $0x50] sm:$0xff]  ;;  %v1905_v11 = vld [vmem:[%s2876_s0 + $0x98] sm:$0xff]  ;;  %v1913_v12 = vld [vmem:[%s2876_s0 + $0x68] sm:$0xff]  ;;  %vm141_vm4 = vcmask 7168   ;;  %vm674_vm7 = vcmask 523264   ;;  %s1804_s23 = smov [#allocation2]  }
   0x8   :  { %v1877_v6 = vld [vmem:[%s2876_s0 + $0x30] sm:$0xff]  ;;  %v1918_v13 = vld [vmem:[%s2876_s0 + $0x38] sm:$0xff]  ;;  %v1931_v15 = vld [vmem:[%s2876_s0 + $0x48] sm:$0xff]  ;;  %s1417_s27 = sshll.u32 %s2885_s9, 4  ;;  %s1418_s27 = int_to_ptr.hbm [resolvable:$true] %s1417_s27 }
   0x9   :  { %v1895_v9 = vld [vmem:[%s2876_s0 + $0x10] sm:$0xff]  ;;  %v1923_v14 = vld [vmem:[%s2876_s0 + $0x78] sm:$0xff]  ;;  %v1943_v17 = vld [vmem:[%s2876_s0 + $0x28] sm:$0xff] }
   0xa   :  { %72 = vadd.xlane.f32.xlu0 %v52_v3  ;;  %v1937_v16 = vld [vmem:[%s2876_s0 + $0x58] sm:$0xff]  ;;  %vm2030_vm2 = vmpackc.low %vm182_vm1, %vm182_vm1 }
   0xb   :  { %68 = vadd.xlane.f32.xlu1 %v48_v4  ;;  %vm1458_vm5 = vmneg %vm141_vm4 }
   0xc   :  { %64 = vadd.xlane.f32.xlu2 %v44_v5  ;;  %v1741_v19 = vpop.eup %1740  ;;  %vm2096_vm6 = vmpackc.low %vm1458_vm5, %vm1458_vm5 }
   0xd   :  { %v75_v20 = vmul.f32 128.0, %v1741_v19  ;;  %vm79_vm0 = vweird.f32 %v1741_v19 }
   0xf   :  { %v76_v21 = vsub.f32 1.0, %v75_v20 }
  0x11   :  { %v77_v22 = vmul.f32 %v1741_v19, %v76_v21  ;;  %v1985_v21 = vld [vmem:[%s2876_s0 + $0x8] sm:$0xff] }
  0x12   :  { %58 = vadd.xlane.f32.xlu0 %v1882_v7 }
  0x13   :  { %60 = vadd.xlane.f32.xlu1 %v1877_v6  ;;  %v78_v23 = vadd.f32 %v1741_v19, %v77_v22 }
  0x14   :  { %54 = vadd.xlane.f32.xlu2 %v1887_v8 }
  0x15   :  { %v1946_v27 = vsel %vm79_vm0, %v1741_v19, %v78_v23 }
  0x1a   :  { %56 = vadd.xlane.f32.xlu0 %v1895_v9 }
  0x1b   :  { %209 = vadd.xlane.f32.xlu1 %v1900_v10 }
  0x1c   :  { %211 = vadd.xlane.f32.xlu2 %v1905_v11 }
  0x22   :  { %199 = vadd.xlane.f32.xlu0 %v1918_v13 }
  0x23   :  { %205 = vadd.xlane.f32.xlu1 %v1913_v12 }
  0x24   :  { %207 = vadd.xlane.f32.xlu2 %v1923_v14 }
  0x2c   :  { %201 = vadd.xlane.f32.xlu2 %v1931_v15 }
  0x34   :  { %203 = vadd.xlane.f32.xlu2 %v1937_v16 }
  0x3c   :  { %197 = vadd.xlane.f32.xlu2 %v1943_v17 }
  0x75   :  { %v71_v24 = vpop.xlane.xlu0 %70 }
  0x76   :  { %v67_v25 = vpop.xlane.xlu1 %66  ;;  %v89_v29 = vmul.f32 %v1946_v27, %v71_v24 }
  0x77   :  { %v63_v26 = vpop.xlane.xlu2 %62  ;;  %v87_v30 = vmul.f32 %v1946_v27, %v67_v25 }
  0x78   :  { %v85_v28 = vmul.f32 %v1946_v27, %v63_v26  ;;  %v99_v38 = vsub.f32 %v50_v0, %v89_v29 }
  0x79   :  { %v97_v39 = vsub.f32 %v46_v1, %v87_v30 }
  0x7a   :  { %v95_v36 = vsub.f32 %v42_v2, %v85_v28 }
  0x7d   :  { %v73_v31 = vpop.xlane.xlu0 %72 }
  0x7e   :  { %v69_v32 = vpop.xlane.xlu1 %68  ;;  %v90_v33 = vmul.f32 %v1946_v27, %v73_v31 }
  0x7f   :  { %v88_v34 = vmul.f32 %v1946_v27, %v69_v32  ;;  %v65_v35 = vpop.xlane.xlu2 %64 }
  0x80   :  { %v86_v37 = vmul.f32 %v1946_v27, %v65_v35  ;;  %v100_v40 = vsub.f32 %v52_v3, %v90_v33 }
  0x81   :  { %v98_v41 = vsub.f32 %v48_v4, %v88_v34 }
  0x82   :  { %v96_v42 = vsub.f32 %v44_v5, %v86_v37  ;;  %v1954_v44 = vpack.i.bf16 %v100_v40, %v99_v38  ;;  %v1956_v46 = vpack.c.bf16 %v100_v40, %v99_v38 }
  0x83   :  { %v1641_v43 = vpack.i.bf16 %v98_v41, %v97_v39  ;;  %v1958_v47 = vpack.c.bf16 %v98_v41, %v97_v39 }
  0x84   :  { %v345_v45 = vpack.c.bf16 %v96_v42, %v95_v36  ;;  %1637 = vrot.lane.b32.xlu0 %v1954_v44, %s1801_s24  ;;  %v1646_v55 = vpack.i.bf16 %v96_v42, %v95_v36 }
  0x85   :  { %1642 = vrot.lane.b32.xlu1 %v1641_v43, %s1801_s24  ;;  %v59_v49 = vpop.xlane.xlu0 %58 }
  0x86   :  { %v61_v48 = vpop.xlane.xlu1 %60  ;;  %458 = vmatpush.bf16.msra.mxu0 %v345_v45  ;;  %v83_v51 = vmul.f32 %v1946_v27, %v59_v49 }
  0x87   :  { %v84_v50 = vmul.f32 %v1946_v27, %v61_v48  ;;  %v55_v52 = vpop.xlane.xlu2 %54 }
  0x88   :  { %v93_v54 = vsub.f32 %v1882_v7, %v83_v51  ;;  %v81_v58 = vmul.f32 %v1946_v27, %v55_v52 }
  0x89   :  { %v94_v53 = vsub.f32 %v1877_v6, %v84_v50 }
  0x8a   :  { %v91_v61 = vsub.f32 %v1887_v8, %v81_v58 }
  0x8b   :  { %v343_v56 = vpack.c.bf16 %v94_v53, %v93_v54  ;;  %v1651_v57 = vpack.i.bf16 %v94_v53, %v93_v54 }
  0x8c   :  { %1647 = vrot.lane.b32.xlu0 %v1646_v55, %s1801_s24 }
  0x8d   :  { %459 = vmatpush.bf16.msra.mxu0 %v343_v56  ;;  %1652 = vrot.lane.b32.xlu2 %v1651_v57, %s1801_s24  ;;  %v57_v59 = vpop.xlane.xlu0 %56 }
  0x8e   :  { %v82_v60 = vmul.f32 %v1946_v27, %v57_v59  ;;  %v210_v3 = vpop.xlane.xlu1 %209 }
  0x8f   :  { %v212_v62 = vpop.xlane.xlu2 %211  ;;  %v221_v6 = vmul.f32 %v210_v3, %v1946_v27 }
  0x90   :  { %v92_v63 = vsub.f32 %v1895_v9, %v82_v60  ;;  %v222_v5 = vmul.f32 %v212_v62, %v1946_v27  ;;  %v1572_v60 = vld [vmem:[%s2877_s1 + $0x14] sm:$0xf] }
  0x91   :  { %v231_v8 = vsub.f32 %v1900_v10, %v221_v6 }
  0x92   :  { %v1656_v0 = vpack.i.bf16 %v92_v63, %v91_v61  ;;  %v341_v2 = vpack.c.bf16 %v92_v63, %v91_v61  ;;  %v232_v7 = vsub.f32 %v1905_v11, %v222_v5  ;;  %v1438_v61 = vld [vmem:[%s2877_s1 + $0x18] sm:$0xf0] }
  0x93   :  { %v2073_v62 = vor.u32 %v1572_v60, %v1438_v61  ;;  %v367_v60 = vld [vmem:[%s2878_s2 + $0x30] sm:$0xff] }
  0x94   :  { %1657 = vrot.lane.b32.xlu0 %v1656_v0, %s1801_s24  ;;  %460 = vmatpush.bf16.msra.mxu0 %v341_v2  ;;  %v1686_v19 = vpack.i.bf16 %v232_v7, %v231_v8  ;;  %v1996_v24 = vpack.c.bf16 %v232_v7, %v231_v8 }
  0x96   :  { %v206_v23 = vpop.xlane.xlu1 %205 }
  0x97   :  { %v208_v1 = vpop.xlane.xlu2 %207  ;;  %v219_v25 = vmul.f32 %v206_v23, %v1946_v27 }
  0x98   :  { %v220_v10 = vmul.f32 %v208_v1, %v1946_v27 }
  0x99   :  { %v229_v28 = vsub.f32 %v1913_v12, %v219_v25 }
  0x9c   :  { %1667 = vrot.lane.b32.xlu0 %v1641_v43, %s1802_s25 }
  0x9f   :  { %v202_v4 = vpop.xlane.xlu2 %201 }
  0xa0   :  { %v217_v18 = vmul.f32 %v202_v4, %v1946_v27 }
  0xa2   :  { %v1988_v22 = vsub.f32 %v1931_v15, %v217_v18  ;;  %v230_v15 = vsub.f32 %v1923_v14, %v220_v10  ;;  %v200_v14 = vpop.xlane.xlu0 %199 }
  0xa3   :  { %v216_v12 = vmul.f32 %v200_v14, %v1946_v27 }
  0xa4   :  { %1677 = vrot.lane.b32.xlu0 %v1651_v57, %s1802_s25  ;;  %v2013_v29 = vpack.c.bf16 %v230_v15, %v229_v28  ;;  %v1691_v37 = vpack.i.bf16 %v230_v15, %v229_v28 }
  0xa5   :  { %v226_v33 = vsub.f32 %v1918_v13, %v216_v12 }
  0xa7   :  { %v204_v9 = vpop.xlane.xlu2 %203 }
  0xa8   :  { %v218_v20 = vmul.f32 %v204_v9, %v1946_v27 }
  0xaa   :  { %v1992_v11 = vsub.f32 %v1937_v16, %v218_v20  ;;  %v2008_v16 = vld [vmem:[%s2876_s0 + $0x18] sm:$0xff] }
  0xac   :  { %1687 = vrot.lane.b32.xlu0 %v1686_v19, %s1802_s25  ;;  %v2001_v26 = vpack.i.bf16 %v1992_v11, %v1988_v22  ;;  %v346_v30 = vpack.c.bf16 %v1992_v11, %v1988_v22 }
  0xaf   :  { %193 = vadd.xlane.f32.xlu1 %v1985_v21  ;;  %v198_v31 = vpop.xlane.xlu2 %197 }
  0xb0   :  { %v215_v32 = vmul.f32 %v198_v31, %v1946_v27 }
  0xb2   :  { %v225_v34 = vsub.f32 %v1943_v17, %v215_v32 }
  0xb4   :  { %1697 = vrot.lane.b32.xlu0 %v2001_v26, %s1802_s25  ;;  %v1726_v35 = vpack.i.bf16 %v226_v33, %v225_v34  ;;  %v344_v36 = vpack.c.bf16 %v226_v33, %v225_v34  ;;  %v365_v33 = vld [vmem:[%s2878_s2 + $0x20] sm:$0xff]  ;;  %v1803_v34 = vmov 0  }
  0xb5   :  { %1738 = vset.pattern.permute.xlu1 %v1803_v34  ;;  %1737 = vset.pattern.permute.xlu0 %v1803_v34 }
  0xb6   :  { %195 = vadd.xlane.f32.xlu2 %v2008_v16 }
  0xb7   :  { %1736 = vset.pattern.permute.xlu2 %v1803_v34  ;;  %v1577_v34 = vld [vmem:[%s2877_s1 + $0x34] sm:$0xf0] }
  0xbc   :  { %1712 = vrot.lane.b32.xlu0 %v1686_v19, %s1801_s24 }
  0xc4   :  { %1727 = vrot.lane.b32.xlu0 %v1726_v35, %s1801_s24 }
  0xc8   :  { %1662 = vrot.lane.b32.xlu1 %v1954_v44, %s1802_s25 }
  0xce   :  { %1672 = vrot.lane.b32.xlu2 %v1646_v55, %s1802_s25 }
  0xd0   :  { %1682 = vrot.lane.b32.xlu1 %v1656_v0, %s1802_s25 }
  0xd8   :  { %1692 = vrot.lane.b32.xlu1 %v1691_v37, %s1802_s25 }
  0xe0   :  { %1702 = vrot.lane.b32.xlu1 %v1726_v35, %s1802_s25  ;;  %v1430_v35 = vld [vmem:[%s2877_s1 + $0x8] sm:$0xf0] }
  0xe7   :  { %v1653_v45 = vpop.permute.xlu2 %1652 }
  0xe8   :  { %1717 = vrot.lane.b32.xlu1 %v1691_v37, %s1801_s24  ;;  %v1655_v51 = vunpack.i.h.bf16 %v1653_v45  ;;  %v1654_v52 = vunpack.i.l.bf16 %v1653_v45 }
  0xea   :  { %v1493_v54 = vpack.c.bf16 %v1655_v51, %v1654_v52  ;;  %v1428_v51 = vld [vmem:[%s2877_s1] sm:$0xf]  ;;  %v1571_v52 = vld [vmem:[%s2877_s1 + $0x4] sm:$0xf0] }
  0xf6   :  { %v1638_v13 = vpop.permute.xlu0 %1637 }
  0xf7   :  { %v1643_v38 = vpop.permute.xlu1 %1642  ;;  %v1640_v39 = vunpack.i.h.bf16 %v1638_v13  ;;  %v1639_v17 = vunpack.i.l.bf16 %v1638_v13 }
  0xf8   :  { %v1645_v41 = vunpack.i.h.bf16 %v1643_v38  ;;  %v1644_v42 = vunpack.i.l.bf16 %v1643_v38 }
  0xf9   :  { %v1484_v43 = vpack.c.bf16 %v1640_v39, %v1639_v17 }
  0xfa   :  { %v1487_v44 = vpack.c.bf16 %v1645_v41, %v1644_v42 }
  0xfb   :  { %1485 = vmatpush.bf16.msk.msra.mxu1 %vm2030_vm2, %v1484_v43  ;;  %1582 = vmatpush.bf16.msk.msra.mxu2 %vm2030_vm2, %v1484_v43 }
  0xfc   :  { %1583 = vmatpush.bf16.msk.msra.mxu3 %vm2030_vm2, %v1484_v43  ;;  %v363_v43 = vld [vmem:[%s2878_s2 + $0x10] sm:$0xff] }
  0xfe   :  { %v1648_v48 = vpop.permute.xlu0 %1647 }
  0xff   :  { %v1650_v49 = vunpack.i.h.bf16 %v1648_v48  ;;  %v1649_v50 = vunpack.i.l.bf16 %v1648_v48  ;;  %1488 = vmatpush.bf16.msk.msra.mxu1 %vm2030_vm2, %v1487_v44  ;;  %1584 = vmatpush.bf16.msk.msra.mxu2 %vm2030_vm2, %v1487_v44 }
 0x100   :  { %1585 = vmatpush.bf16.msk.msra.mxu3 %vm2030_vm2, %v1487_v44 }
 0x101   :  { %v1490_v53 = vpack.c.bf16 %v1650_v49, %v1649_v50 }
 0x103   :  { %1491 = vmatpush.bf16.msk.msra.mxu1 %vm2030_vm2, %v1490_v53  ;;  %1586 = vmatpush.bf16.msk.msra.mxu2 %vm2030_vm2, %v1490_v53 }
 0x104   :  { %1587 = vmatpush.bf16.msk.msra.mxu3 %vm2030_vm2, %v1490_v53 }
 0x106   :  { %v1658_v55 = vpop.permute.xlu0 %1657 }
 0x107   :  { %v1660_v56 = vunpack.i.h.bf16 %v1658_v55  ;;  %v1659_v57 = vunpack.i.l.bf16 %v1658_v55  ;;  %1494 = vmatpush.bf16.msk.msra.mxu1 %vm2030_vm2, %v1493_v54  ;;  %1588 = vmatpush.bf16.msk.msra.mxu2 %vm2030_vm2, %v1493_v54  ;;  %v2139_v55 = vor.u32 %v1571_v52, %v1428_v51 }
 0x108   :  { %1589 = vmatpush.bf16.msk.msra.mxu3 %vm2030_vm2, %v1493_v54 }
 0x109   :  { %v1496_v58 = vpack.c.bf16 %v1660_v56, %v1659_v57 }
 0x10b   :  { %1497 = vmatpush.bf16.msk.msra.mxu1 %vm2030_vm2, %v1496_v58  ;;  %1590 = vmatpush.bf16.msk.msra.mxu2 %vm2030_vm2, %v1496_v58 }
 0x10c   :  { %1591 = vmatpush.bf16.msk.msra.mxu3 %vm2030_vm2, %v1496_v58  ;;  %v362_v58 = vld [vmem:[%s2878_s2 + $0x8] sm:$0xff] }
 0x10e   :  { %v1668_v59 = vpop.permute.xlu0 %1667 }
 0x10f   :  { %493 = vmatpush.bf16.msra.mxu1 %v1956_v46  ;;  %1592 = vmatpush.bf16.msra.mxu2 %v1956_v46  ;;  %v1670_v15 = vunpack.i.h.bf16 %v1668_v59  ;;  %v1669_v28 = vunpack.i.l.bf16 %v1668_v59  ;;  %v361_v59 = vld [vmem:[%s2878_s2] sm:$0xff] }
 0x110   :  { %1593 = vmatpush.bf16.msra.mxu3 %v1956_v46 }
 0x111   :  { %v1466_v14 = vpack.c.bf16 %v1670_v15, %v1669_v28  ;;  %v1444_v15 = vld [vmem:[%s2877_s1 + $0x20] sm:$0xf]  ;;  %v1575_v28 = vld [vmem:[%s2877_s1 + $0x24] sm:$0xf0] }
 0x113   :  { %494 = vmatpush.bf16.msra.mxu1 %v1958_v47  ;;  %1594 = vmatpush.bf16.msra.mxu2 %v1958_v47 }
 0x114   :  { %1595 = vmatpush.bf16.msra.mxu3 %v1958_v47 }
 0x116   :  { %v1678_v63 = vpop.permute.xlu0 %1677  ;;  %1499 = vmatmul.msk.bf16.vlgmr.msra.gmra.mxu2 %vm445_vm3, %v2073_v62 }
 0x117   :  { %516 = vmatpush.bf16.msra.mxu2 %v346_v30  ;;  %v1680_v38 = vunpack.i.h.bf16 %v1678_v63  ;;  %v1679_v13 = vunpack.i.l.bf16 %v1678_v63 }
 0x119   :  { %v1476_v17 = vpack.c.bf16 %v1680_v38, %v1679_v13  ;;  %v607_v38 = vld [vmem:[%s2880_s4 + $0x8] sm:$0xff]  ;;  %v832_v13 = vld [vmem:[%s2882_s6 + $0x38] sm:$0xff] }
 0x11b   :  { %517 = vmatpush.bf16.msra.mxu2 %v344_v36  ;;  %v368_v36 = vld [vmem:[%s2878_s2 + $0x38] sm:$0xff] }
 0x11c   :  { %406 = vperm.xlu0 %1737, %v368_v36  }
 0x11e   :  { %v1688_v0 = vpop.permute.xlu0 %1687 }
 0x11f   :  { %v1690_v6 = vunpack.i.h.bf16 %v1688_v0  ;;  %v1689_v7 = vunpack.i.l.bf16 %v1688_v0  ;;  %v1574_v0 = vld [vmem:[%s2877_s1 + $0x24] sm:$0xf] }
 0x121   :  { %v1505_v22 = vpack.c.bf16 %v1690_v6, %v1689_v7  ;;  %v611_v6 = vld [vmem:[%s2880_s4 + $0x28] sm:$0xff] }
 0x122   :  { %v194_v46 = vpop.xlane.xlu1 %193  ;;  %v366_v7 = vld [vmem:[%s2878_s2 + $0x28] sm:$0xff] }
 0x123   :  { %v213_v1 = vmul.f32 %v194_v46, %v1946_v27  ;;  %v1446_v46 = vld [vmem:[%s2877_s1 + $0x28] sm:$0xf0] }
 0x124   :  { %371 = vperm.xlu0 %1737, %v361_v59   ;;  %v826_v59 = vld [vmem:[%s2882_s6 + $0x8] sm:$0xff] }
 0x125   :  { %v223_v4 = vsub.f32 %v1985_v21, %v213_v1  ;;  %v2165_v1 = vor.u32 %v1574_v0, %v1446_v46 }
 0x126   :  { %v2084_v2 = vpop.permute.xlu0 %1697 }
 0x127   :  { %v1700_v45 = vunpack.i.h.bf16 %v2084_v2  ;;  %v1699_v48 = vunpack.i.l.bf16 %v2084_v2  ;;  %v1576_v2 = vld [vmem:[%s2877_s1 + $0x34] sm:$0xf]  ;;  %1500 = vmatmul.msk.bf16.gmra.mxu2 %vm445_vm3, %v2165_v1 }
 0x129   :  { %v196_v3 = vpop.xlane.xlu2 %195  ;;  %v1515_v56 = vpack.c.bf16 %v1700_v45, %v1699_v48  ;;  %v827_v45 = vld [vmem:[%s2882_s6 + $0x10] sm:$0xff] }
 0x12a   :  { %v214_v47 = vmul.f32 %v196_v3, %v1946_v27  ;;  %v1454_v3 = vld [vmem:[%s2877_s1 + $0x38] sm:$0xf0] }
 0x12c   :  { %v224_v5 = vsub.f32 %v2008_v16, %v214_v47  ;;  %v2173_v47 = vor.u32 %v1576_v2, %v1454_v3  ;;  %v761_v3 = vld [vmem:[%s2881_s5] sm:$0xff] }
 0x12e   :  { %v1731_v8 = vpack.i.bf16 %v224_v5, %v223_v4  ;;  %v342_v9 = vpack.c.bf16 %v224_v5, %v223_v4  ;;  %v1713_v18 = vpop.permute.xlu0 %1712  ;;  %1501 = vmatmul.msk.bf16.vlgmr.msra.gmra.mxu3 %vm445_vm3, %v2173_v47  ;;  %v612_v5 = vld [vmem:[%s2880_s4 + $0x30] sm:$0xff] }
 0x12f   :  { %v1715_v19 = vunpack.i.h.bf16 %v1713_v18  ;;  %v1714_v20 = vunpack.i.l.bf16 %v1713_v18  ;;  %646 = vperm.xlu0 %1737, %v612_v5  }
 0x130   :  { %1732 = vrot.lane.b32.xlu1 %v1731_v8, %s1801_s24  ;;  %1707 = vrot.lane.b32.xlu2 %v1731_v8, %s1802_s25 }
 0x131   :  { %518 = vmatpush.bf16.msra.mxu2 %v342_v9  ;;  %v1528_v21 = vpack.c.bf16 %v1715_v19, %v1714_v20  ;;  %v1673_v30 = vpop.permute.xlu2 %1672  ;;  %v1436_v19 = vld [vmem:[%s2877_s1 + $0x10] sm:$0xf]  ;;  %v1573_v20 = vld [vmem:[%s2877_s1 + $0x14] sm:$0xf0] }
 0x132   :  { %v1675_v31 = vunpack.i.h.bf16 %v1673_v30  ;;  %v1674_v12 = vunpack.i.l.bf16 %v1673_v30  ;;  %v2223_v30 = vor.u32 %v1575_v28, %v1444_v15 }
 0x133   :  { %1596 = vmatpush.bf16.msk.msrb.mxu1 %vm2030_vm2, %v1528_v21  ;;  %1597 = vmatpush.bf16.msk.msrb.mxu3 %vm2030_vm2, %v1528_v21 }
 0x134   :  { %v1471_v39 = vpack.c.bf16 %v1675_v31, %v1674_v12  ;;  %v613_v31 = vld [vmem:[%s2880_s4 + $0x38] sm:$0xff]  ;;  %v765_v12 = vld [vmem:[%s2881_s5 + $0x20] sm:$0xff] }
 0x135   :  { %1506 = vmatpush.bf16.msk.msra.mxu2 %vm2096_vm6, %v1505_v22 }
 0x136   :  { %v1728_v51 = vpop.permute.xlu0 %1727 }
 0x138   :  { %1722 = vrot.lane.b32.xlu2 %v2001_v26, %s1801_s24  ;;  %v1570_v26 = vld [vmem:[%s2877_s1 + $0x4] sm:$0xf]  ;;  %391 = vperm.xlu1 %1738, %v365_v33   ;;  %v768_v33 = vld [vmem:[%s2881_s5 + $0x38] sm:$0xff]  ;;  %s1415_s24 = sshll.u32 %s1804_s23, 4  ;;  %s1416_s24 = int_to_ptr.vmem [resolvable:$true] %s1415_s24 }
 0x139   :  { %v2120_v37 = vor.u32 %v1570_v26, %v1430_v35  ;;  %v1452_v26 = vld [vmem:[%s2877_s1 + $0x30] sm:$0xf]  ;;  %v764_v35 = vld [vmem:[%s2881_s5 + $0x18] sm:$0xff] }
 0x13a   :  { %v1663_v10 = vpop.permute.xlu1 %1662  ;;  %v2250_v36 = vor.u32 %v1577_v34, %v1452_v26 }
 0x13b   :  { %v1665_v23 = vunpack.i.h.bf16 %v1663_v10  ;;  %v1664_v25 = vunpack.i.l.bf16 %v1663_v10  ;;  %1498 = vmatmul.msk.bf16.vlgmr.msra.gmra.mxu1 %vm445_vm3, %v2120_v37  ;;  %v767_v10 = vld [vmem:[%s2881_s5 + $0x30] sm:$0xff] }
 0x13d   :  { %v1461_v16 = vpack.c.bf16 %v1665_v23, %v1664_v25  ;;  %v610_v23 = vld [vmem:[%s2880_s4 + $0x20] sm:$0xff]  ;;  %v364_v25 = vld [vmem:[%s2878_s2 + $0x18] sm:$0xff] }
 0x13e   :  { %636 = vperm.xlu0 %1737, %v610_v23  }
 0x13f   :  { %1462 = vmatpush.bf16.msk.msra.mxu0 %vm2096_vm6, %v1461_v16  ;;  %v766_v16 = vld [vmem:[%s2881_s5 + $0x28] sm:$0xff] }
 0x140   :  { %381 = vperm.xlu1 %1738, %v363_v43   ;;  %401 = vperm.xlu2 %1736, %v367_v60   ;;  %v829_v60 = vld [vmem:[%s2882_s6 + $0x20] sm:$0xff] }
 0x142   :  { %v1683_v32 = vpop.permute.xlu1 %1682 }
 0x143   :  { %1467 = vmatpush.bf16.msk.msra.mxu0 %vm2096_vm6, %v1466_v14  ;;  %v1685_v41 = vunpack.i.h.bf16 %v1683_v32  ;;  %v1684_v42 = vunpack.i.l.bf16 %v1683_v32  ;;  %v609_v14 = vld [vmem:[%s2880_s4 + $0x18] sm:$0xff]  ;;  %v608_v32 = vld [vmem:[%s2880_s4 + $0x10] sm:$0xff] }
 0x145   :  { %v1481_v53 = vpack.c.bf16 %v1685_v41, %v1684_v42  ;;  %v831_v41 = vld [vmem:[%s2882_s6 + $0x30] sm:$0xff] }
 0x146   :  { %631 = vperm.xlu0 %1737, %v609_v14  }
 0x147   :  { %1472 = vmatpush.bf16.msk.msra.mxu0 %vm2096_vm6, %v1471_v39  ;;  %v763_v39 = vld [vmem:[%s2881_s5 + $0x10] sm:$0xff] }
 0x148   :  { %376 = vperm.xlu1 %1738, %v362_v58   ;;  %396 = vperm.xlu2 %1736, %v366_v7  }
 0x14a   :  { %v1693_v44 = vpop.permute.xlu1 %1692 }
 0x14b   :  { %v1695_v49 = vunpack.i.h.bf16 %v1693_v44  ;;  %v1694_v50 = vunpack.i.l.bf16 %v1693_v44  ;;  %1477 = vmatpush.bf16.msk.msra.mxu0 %vm2096_vm6, %v1476_v17  ;;  %v606_v17 = vld [vmem:[%s2880_s4] sm:$0xff] }
 0x14d   :  { %v1510_v54 = vpack.c.bf16 %v1695_v49, %v1694_v50  ;;  %v762_v49 = vld [vmem:[%s2881_s5 + $0x8] sm:$0xff] }
 0x14e   :  { %626 = vperm.xlu0 %1737, %v608_v32   ;;  %v830_v50 = vld [vmem:[%s2882_s6 + $0x28] sm:$0xff] }
 0x14f   :  { %1482 = vmatpush.bf16.msk.msra.mxu0 %vm2096_vm6, %v1481_v53  ;;  %1511 = vmatpush.bf16.msk.msra.mxu2 %vm2096_vm6, %v1510_v54  ;;  %v825_v53 = vld [vmem:[%s2882_s6] sm:$0xff] }
 0x150   :  { %641 = vperm.xlu1 %1738, %v611_v6   ;;  %386 = vperm.xlu2 %1736, %v364_v25  }
 0x152   :  { %v1703_v57 = vpop.permute.xlu1 %1702  ;;  %466 = vmatmul.bf16.vlgmr.msra.gmra.mxu0 %v2139_v55 }
 0x153   :  { %1529 = vmatpush.bf16.msk.msrb.mxu0 %vm2030_vm2, %v1528_v21  ;;  %v1705_v61 = vunpack.i.h.bf16 %v1703_v57  ;;  %v1704_v63 = vunpack.i.l.bf16 %v1703_v57  ;;  %1516 = vmatpush.bf16.msk.msra.mxu2 %vm2096_vm6, %v1515_v56  ;;  %v2196_v21 = vor.u32 %v1573_v20, %v1436_v19  ;;  %v1730_v56 = vunpack.i.h.bf16 %v1728_v51 }
 0x154   :  { %v1729_v57 = vunpack.i.l.bf16 %v1728_v51 }
 0x155   :  { %v1520_v4 = vpack.c.bf16 %v1705_v61, %v1704_v63  ;;  %v828_v61 = vld [vmem:[%s2882_s6 + $0x18] sm:$0xff] }
 0x156   :  { %621 = vperm.xlu0 %1737, %v607_v38  }
 0x157   :  { %1521 = vmatpush.bf16.msk.msra.mxu2 %vm2096_vm6, %v1520_v4 }
 0x158   :  { %801 = vperm.xlu1 %1738, %v767_v10   ;;  %651 = vperm.xlu2 %1736, %v613_v31  }
 0x15a   :  { %v1718_v8 = vpop.permute.xlu1 %1717 }
 0x15b   :  { %v1720_v9 = vunpack.i.h.bf16 %v1718_v8  ;;  %v1719_v18 = vunpack.i.l.bf16 %v1718_v8 }
 0x15d   :  { %v1531_v22 = vpack.c.bf16 %v1720_v9, %v1719_v18 }
 0x15e   :  { %616 = vperm.xlu0 %1737, %v606_v17  }
 0x15f   :  { %1532 = vmatpush.bf16.msk.msrb.mxu0 %vm2030_vm2, %v1531_v22  ;;  %1598 = vmatpush.bf16.msk.msrb.mxu1 %vm2030_vm2, %v1531_v22 }
 0x160   :  { %1599 = vmatpush.bf16.msk.msrb.mxu3 %vm2030_vm2, %v1531_v22  ;;  %796 = vperm.xlu1 %1738, %v766_v16  }
 0x161   :  { %806 = vperm.xlu2 %1736, %v768_v33  }
 0x162   :  { %471 = vmatmul.bf16.gmra.mxu0 %v2196_v21 }
 0x166   :  { %776 = vperm.xlu0 %1737, %v762_v49  }
 0x168   :  { %791 = vperm.xlu1 %1738, %v765_v12  }
 0x169   :  { %870 = vperm.xlu2 %1736, %v832_v13  }
 0x16e   :  { %840 = vperm.xlu0 %1737, %v826_v59  }
 0x170   :  { %786 = vperm.xlu1 %1738, %v764_v35  }
 0x171   :  { %865 = vperm.xlu2 %1736, %v831_v41  }
 0x172   :  { %476 = vmatmul.bf16.gmra.mxu0 %v2223_v30 }
 0x178   :  { %781 = vperm.xlu1 %1738, %v763_v39  }
 0x179   :  { %860 = vperm.xlu2 %1736, %v830_v50  }
 0x180   :  { %845 = vperm.xlu1 %1738, %v827_v45  }
 0x181   :  { %855 = vperm.xlu2 %1736, %v829_v60  }
 0x182   :  { %481 = vmatmul.bf16.gmra.mxu0 %v2250_v36 }
 0x188   :  { %835 = vperm.xlu1 %1738, %v825_v53  }
 0x189   :  { %850 = vperm.xlu2 %1736, %v828_v61  }
 0x18a   :  { %v1708_v42 = vpop.permute.xlu2 %1707 }
 0x18b   :  { %v1710_v43 = vunpack.i.h.bf16 %v1708_v42  ;;  %v1709_v44 = vunpack.i.l.bf16 %v1708_v42 }
 0x18d   :  { %v1525_v48 = vpack.c.bf16 %v1710_v43, %v1709_v44 }
 0x18f   :  { %1526 = vmatpush.bf16.msk.msra.mxu2 %vm2096_vm6, %v1525_v48 }
 0x191   :  { %771 = vperm.xlu2 %1736, %v761_v3  }
 0x192   :  { %v1723_v52 = vpop.permute.xlu2 %1722  ;;  %524 = vmatmul.bf16.vlgmr.msra.gmra.mxu2 %v2139_v55  ;;  %v1537_v55 = vpack.c.bf16 %v1730_v56, %v1729_v57 }
 0x193   :  { %v1725_v11 = vunpack.i.h.bf16 %v1723_v52  ;;  %v1724_v54 = vunpack.i.l.bf16 %v1723_v52 }
 0x195   :  { %v1534_v58 = vpack.c.bf16 %v1725_v11, %v1724_v54 }
 0x197   :  { %1535 = vmatpush.bf16.msk.msrb.mxu0 %vm2030_vm2, %v1534_v58  ;;  %1600 = vmatpush.bf16.msk.msrb.mxu1 %vm2030_vm2, %v1534_v58 }
 0x198   :  { %1601 = vmatpush.bf16.msk.msrb.mxu3 %vm2030_vm2, %v1534_v58  ;;  %v1578_v58 = vld [vmem:[%s2879_s3] sm:$0xff] }
 0x199   :  { %v501_v5 = vpop.f32.mrf.mxu2 }
 0x19a   :  { %v2330_v8 = vpop.permute.xlu2 %401 }
 0x19b   :  { %1538 = vmatpush.bf16.msk.msrb.mxu0 %vm2030_vm2, %v1537_v55  ;;  %1602 = vmatpush.bf16.msk.msrb.mxu1 %vm2030_vm2, %v1537_v55 }
 0x19c   :  { %1603 = vmatpush.bf16.msk.msrb.mxu3 %vm2030_vm2, %v1537_v55  ;;  %v1579_v55 = vld [vmem:[%s2879_s3 + $0x8] sm:$0xff] }
 0x1a1   :  { %v503_v7 = vpop.f32.mrf.mxu2 }
 0x1a2   :  { %v1733_v63 = vpop.permute.xlu1 %1732  ;;  %529 = vmatmul.bf16.gmra.mxu2 %v2196_v21 }
 0x1a3   :  { %v1735_v0 = vunpack.i.h.bf16 %v1733_v63  ;;  %v1734_v46 = vunpack.i.l.bf16 %v1733_v63 }
 0x1a5   :  { %v1540_v2 = vpack.c.bf16 %v1735_v0, %v1734_v46  ;;  %v1580_v46 = vld [vmem:[%s2879_s3 + $0x10] sm:$0xff] }
 0x1a7   :  { %1541 = vmatpush.bf16.msk.msrb.mxu0 %vm2030_vm2, %v1540_v2  ;;  %1604 = vmatpush.bf16.msk.msrb.mxu1 %vm2030_vm2, %v1540_v2 }
 0x1a8   :  { %1605 = vmatpush.bf16.msk.msrb.mxu3 %vm2030_vm2, %v1540_v2 }
 0x1aa   :  { %v2332_v9 = vpop.permute.xlu1 %391 }
 0x1ab   :  { %551 = vmatpush.bf16.msrb.mxu0 %v1996_v24  ;;  %1606 = vmatpush.bf16.msrb.mxu1 %v1996_v24 }
 0x1ac   :  { %1607 = vmatpush.bf16.msrb.mxu3 %v1996_v24 }
 0x1af   :  { %552 = vmatpush.bf16.msrb.mxu0 %v2013_v29  ;;  %1608 = vmatpush.bf16.msrb.mxu1 %v2013_v29 }
 0x1b0   :  { %1609 = vmatpush.bf16.msrb.mxu3 %v2013_v29 }
 0x1b1   :  { %v511_v18 = vpop.f32.mrf.mxu3 }
 0x1b2   :  { %534 = vmatmul.bf16.gmra.mxu2 %v2223_v30  ;;  %1542 = vmatmul.msk.bf16.vlgmr.msrb.gmra.mxu0 %vm445_vm3, %v2120_v37  ;;  %v2336_v20 = vpop.permute.xlu1 %381 }
 0x1b3   :  { %1544 = vmatmul.msk.bf16.vlgmr.msrb.gmra.mxu1 %vm445_vm3, %v2165_v1  ;;  %1545 = vmatmul.msk.bf16.vlgmr.msrb.gmra.mxu3 %vm445_vm3, %v2173_v47  ;;  %v506_v1 = vpop.f32.mrf.mxu2  ;;  %v2334_v47 = vpop.permute.xlu2 %396 }
 0x1b8   :  { %v496_v21 = vpop.f32.mrf.mxu1 }
 0x1b9   :  { %v513_v16 = vpop.f32.mrf.mxu3 }
 0x1ba   :  { %v2348_v35 = vpop.permute.xlu1 %376 }
 0x1bb   :  { %v508_v15 = vpop.f32.mrf.mxu2  ;;  %v2343_v30 = vpop.permute.xlu2 %386 }
 0x1c0   :  { %v498_v45 = vpop.f32.mrf.mxu1 }
 0x1c2   :  { %539 = vmatmul.bf16.gmra.mxu2 %v2250_v36  ;;  %1543 = vmatmul.msk.bf16.gmra.mxu0 %vm445_vm3, %v2073_v62  ;;  %v2338_v62 = vpop.permute.xlu0 %406 }
 0x1ca   :  { %v2350_v36 = vpop.permute.xlu0 %371 }
 0x1cf   :  { %v467_v24 = vpop.f32.mrf.mxu0 }
 0x1d0   :  { %v468_v39 = vadd.f32 %v467_v24, %v2350_v36 }
 0x1d2   :  { %v497_v48 = vadd.f32 %v496_v21, %v468_v39 }
 0x1d4   :  { %v574_v53 = vmax.f32 %v497_v48, 0.0  ;;  %v2394_v48 = vpop.permute.xlu0 %646 }
 0x1d7   :  { %v469_v40 = vpop.f32.mrf.mxu0 }
 0x1d8   :  { %v470_v13 = vadd.f32 %v469_v40, %v2348_v35 }
 0x1da   :  { %v499_v50 = vadd.f32 %v498_v45, %v470_v13 }
 0x1dc   :  { %v576_v11 = vmax.f32 %v499_v50, 0.0 }
 0x1de   :  { %v598_v57 = vpack.c.bf16 %v576_v11, %v574_v53 }
 0x1df   :  { %v472_v4 = vpop.f32.mrf.mxu0 }
 0x1e0   :  { %v473_v31 = vadd.f32 %v472_v4, %v2336_v20 }
 0x1e2   :  { %v502_v17 = vadd.f32 %v501_v5, %v473_v31 }
 0x1e4   :  { %v578_v49 = vmax.f32 %v502_v17, 0.0 }
 0x1e7   :  { %v474_v29 = vpop.f32.mrf.mxu0 }
 0x1e8   :  { %v475_v12 = vadd.f32 %v474_v29, %v2343_v30 }
 0x1ea   :  { %v504_v41 = vadd.f32 %v503_v7, %v475_v12 }
 0x1ec   :  { %v580_v51 = vmax.f32 %v504_v41, 0.0 }
 0x1ee   :  { %v600_v54 = vpack.c.bf16 %v580_v51, %v578_v49 }
 0x1ef   :  { %v477_v6 = vpop.f32.mrf.mxu0 }
 0x1f0   :  { %v478_v10 = vadd.f32 %v477_v6, %v2332_v9  ;;  %v1581_v6 = vld [vmem:[%s2879_s3 + $0x18] sm:$0xff] }
 0x1f2   :  { %v507_v32 = vadd.f32 %v506_v1, %v478_v10 }
 0x1f4   :  { %v582_v42 = vmax.f32 %v507_v32, 0.0 }
 0x1f7   :  { %v479_v37 = vpop.f32.mrf.mxu0 }
 0x1f8   :  { %v480_v23 = vadd.f32 %v479_v37, %v2334_v47 }
 0x1fa   :  { %v509_v26 = vadd.f32 %v508_v15, %v480_v23 }
 0x1fc   :  { %v584_v43 = vmax.f32 %v509_v26, 0.0 }
 0x1fe   :  { %v602_v52 = vpack.c.bf16 %v584_v43, %v582_v42  ;;  %v2388_v43 = vpop.permute.xlu1 %641 }
 0x1ff   :  { %v482_v19 = vpop.f32.mrf.mxu0 }
 0x200   :  { %v483_v22 = vadd.f32 %v482_v19, %v2330_v8 }
 0x202   :  { %v512_v25 = vadd.f32 %v511_v18, %v483_v22 }
 0x204   :  { %v586_v33 = vmax.f32 %v512_v25, 0.0 }
 0x206   :  { %v2396_v49 = vpop.permute.xlu1 %801 }
 0x207   :  { %v484_v28 = vpop.f32.mrf.mxu0 }
 0x208   :  { %v485_v14 = vadd.f32 %v484_v28, %v2338_v62 }
 0x20a   :  { %v514_v34 = vadd.f32 %v513_v16, %v485_v14 }
 0x20c   :  { %v588_v38 = vmax.f32 %v514_v34, 0.0 }
 0x20e   :  { %v604_v44 = vpack.c.bf16 %v588_v38, %v586_v33  ;;  %v2406_v11 = vpop.permute.xlu1 %796 }
 0x210   :  { %691 = vmatpush.bf16.msra.mxu1 %v604_v44 }
 0x214   :  { %692 = vmatpush.bf16.msra.mxu1 %v602_v52  ;;  %v2402_v52 = vpop.permute.xlu0 %636 }
 0x215   :  { %v525_v56 = vpop.f32.mrf.mxu2 }
 0x216   :  { %v526_v33 = vadd.f32 %v525_v56, %v2350_v36  ;;  %v2384_v36 = vpop.permute.xlu2 %651 }
 0x218   :  { %693 = vmatpush.bf16.msra.mxu1 %v600_v54 }
 0x21c   :  { %694 = vmatpush.bf16.msra.mxu1 %v598_v57  ;;  %v2410_v57 = vpop.permute.xlu0 %631 }
 0x21d   :  { %v527_v59 = vpop.f32.mrf.mxu2 }
 0x21e   :  { %v2390_v44 = vpop.permute.xlu2 %806 }
 0x21f   :  { %1562 = vmatmul.msk.bf16.vlgmr.msra.gmra.mxu1 %vm674_vm7, %v1578_v58 }
 0x225   :  { %v530_v60 = vpop.f32.mrf.mxu2 }
 0x226   :  { %v2400_v51 = vpop.permute.xlu2 %870 }
 0x22d   :  { %v532_v61 = vpop.f32.mrf.mxu2 }
 0x22e   :  { %v2408_v54 = vpop.permute.xlu2 %865 }
 0x22f   :  { %1563 = vmatmul.msk.bf16.gmra.mxu1 %vm674_vm7, %v1579_v55  ;;  %v554_v63 = vpop.f32.mrf.mxu0 }
 0x230   :  { %v564_v24 = vpop.f32.mrf.mxu1  ;;  %v555_v13 = vadd.f32 %v554_v63, %v526_v33 }
 0x232   :  { %v575_v41 = vmax.f32 %v555_v13, 0.0 }
 0x235   :  { %v535_v0 = vpop.f32.mrf.mxu2 }
 0x236   :  { %v569_v40 = vpop.f32.mrf.mxu3  ;;  %v536_v18 = vadd.f32 %v535_v0, %v2332_v9  ;;  %v528_v9 = vadd.f32 %v527_v59, %v2348_v35  ;;  %v2413_v59 = vpop.permute.xlu1 %791 }
 0x237   :  { %v556_v2 = vpop.f32.mrf.mxu0 }
 0x238   :  { %v566_v37 = vpop.f32.mrf.mxu1  ;;  %v565_v15 = vadd.f32 %v564_v24, %v536_v18  ;;  %v557_v26 = vadd.f32 %v556_v2, %v528_v9  ;;  %v2423_v2 = vpop.permute.xlu0 %626 }
 0x23a   :  { %v583_v32 = vmax.f32 %v565_v15, 0.0  ;;  %v577_v39 = vmax.f32 %v557_v26, 0.0 }
 0x23d   :  { %v537_v3 = vpop.f32.mrf.mxu2 }
 0x23e   :  { %v538_v7 = vadd.f32 %v537_v3, %v2334_v47  ;;  %v571_v21 = vpop.f32.mrf.mxu3  ;;  %v531_v47 = vadd.f32 %v530_v60, %v2336_v20  ;;  %v599_v20 = vpack.c.bf16 %v577_v39, %v575_v41  ;;  %v2425_v24 = vpop.permute.xlu1 %786 }
 0x23f   :  { %1564 = vmatmul.msk.bf16.gmra.mxu1 %vm674_vm7, %v1580_v46  ;;  %v559_v29 = vpop.f32.mrf.mxu0 }
 0x240   :  { %v567_v10 = vadd.f32 %v566_v37, %v538_v7 }
 0x242   :  { %v585_v14 = vmax.f32 %v567_v10, 0.0 }
 0x244   :  { %v603_v34 = vpack.c.bf16 %v585_v14, %v583_v32 }
 0x245   :  { %v540_v4 = vpop.f32.mrf.mxu2 }
 0x246   :  { %v541_v5 = vadd.f32 %v540_v4, %v2330_v8  ;;  %v533_v8 = vadd.f32 %v532_v61, %v2343_v30  ;;  %v2416_v61 = vpop.permute.xlu2 %860 }
 0x247   :  { %v561_v25 = vpop.f32.mrf.mxu0 }
 0x248   :  { %v570_v19 = vadd.f32 %v569_v40, %v541_v5  ;;  %v562_v31 = vadd.f32 %v561_v25, %v533_v8 }
 0x24a   :  { %v587_v28 = vmax.f32 %v570_v19, 0.0  ;;  %v581_v38 = vmax.f32 %v562_v31, 0.0 }
 0x24d   :  { %v542_v1 = vpop.f32.mrf.mxu2 }
 0x24e   :  { %v543_v22 = vadd.f32 %v542_v1, %v2338_v62  ;;  %v560_v62 = vadd.f32 %v559_v29, %v531_v47  ;;  %v2429_v29 = vpop.permute.xlu0 %621  ;;  %v2431_v5 = vpop.permute.xlu2 %855 }
 0x24f   :  { %1565 = vmatmul.msk.bf16.gmra.mxu1 %vm674_vm7, %v1581_v6 }
 0x250   :  { %v572_v23 = vadd.f32 %v571_v21, %v543_v22  ;;  %v579_v30 = vmax.f32 %v560_v62, 0.0 }
 0x252   :  { %v589_v16 = vmax.f32 %v572_v23, 0.0  ;;  %v601_v17 = vpack.c.bf16 %v581_v38, %v579_v30 }
 0x254   :  { %v605_v12 = vpack.c.bf16 %v589_v16, %v587_v28 }
 0x256   :  { %720 = vmatpush.bf16.msra.mxu3 %v605_v12  ;;  %v2435_v37 = vpop.permute.xlu0 %616  ;;  %v2437_v1 = vpop.permute.xlu2 %850 }
 0x25a   :  { %721 = vmatpush.bf16.msra.mxu3 %v603_v34 }
 0x25e   :  { %722 = vmatpush.bf16.msra.mxu3 %v601_v17  ;;  %v2443_v25 = vpop.permute.xlu0 %776  ;;  %v2445_v8 = vpop.permute.xlu2 %771 }
 0x262   :  { %723 = vmatpush.bf16.msra.mxu3 %v599_v20 }
 0x265   :  { %1566 = vmatmul.msk.bf16.vlgmr.msra.gmra.mxu3 %vm674_vm7, %v1578_v58 }
 0x266   :  { %v2455_v26 = vpop.permute.xlu0 %840 }
 0x275   :  { %1567 = vmatmul.msk.bf16.gmra.mxu3 %vm674_vm7, %v1579_v55 }
 0x285   :  { %1568 = vmatmul.msk.bf16.gmra.mxu3 %vm674_vm7, %v1580_v46 }
 0x295   :  { %1569 = vmatmul.msk.bf16.gmra.mxu3 %vm674_vm7, %v1581_v6  ;;  %v2433_v6 = vpop.permute.xlu1 %781 }
 0x29c   :  { %v2382_v35 = vpop.f32.mrf.mxu1 }
 0x29d   :  { %v2439_v18 = vpop.permute.xlu1 %845 }
 0x2a4   :  { %v2386_v42 = vpop.f32.mrf.mxu1 }
 0x2a5   :  { %v2448_v16 = vpop.permute.xlu1 %835 }
 0x2ac   :  { %v2392_v45 = vpop.f32.mrf.mxu1 }
 0x2b4   :  { %v2398_v50 = vpop.f32.mrf.mxu1 }
 0x2bc   :  { %v2404_v53 = vpop.f32.mrf.mxu1 }
 0x2c4   :  { %v708_v56 = vpop.f32.mrf.mxu1 }
 0x2c5   :  { %v709_v58 = vadd.f32 %v708_v56, %v2388_v43 }
 0x2c7   :  { %v755_v60 = vmax.f32 %v709_v58, 0.0 }
 0x2c9   :  { %v819_v55 = vmul.f32 %v2406_v11, %v755_v60 }
 0x2cb   :  { %v2419_v63 = vadd.f32 %v2416_v61, %v819_v55 }
 0x2cc   :  { %v711_v0 = vpop.f32.mrf.mxu1 }
 0x2cd   :  { %v712_v46 = vadd.f32 %v711_v0, %v2394_v48  ;;  %899 = vadd.xlane.f32.xlu0 %v2419_v63 }
 0x2cf   :  { %v757_v3 = vmax.f32 %v712_v46, 0.0 }
 0x2d1   :  { %v821_v40 = vmul.f32 %v2396_v49, %v757_v3 }
 0x2d3   :  { %v885_v4 = vadd.f32 %v2408_v54, %v821_v40 }
 0x2d4   :  { %v713_v19 = vpop.f32.mrf.mxu1 }
 0x2d5   :  { %901 = vadd.xlane.f32.xlu1 %v885_v4  ;;  %v919_v7 = vmul.f32 %v885_v4, %v885_v4  ;;  %v714_v21 = vadd.f32 %v713_v19, %v2384_v36 }
 0x2d7   :  { %v759_v15 = vmax.f32 %v714_v21, 0.0 }
 0x2d9   :  { %v823_v31 = vmul.f32 %v2390_v44, %v759_v15 }
 0x2db   :  { %v887_v33 = vadd.f32 %v2400_v51, %v823_v31 }
 0x2dd   :  { %933 = vadd.xlane.f32.xlu1 %v919_v7  ;;  %v920_v30 = vmul.f32 %v887_v33, %v887_v33 }
 0x2e8   :  { %v725_v22 = vpop.f32.mrf.mxu3 }
 0x2e9   :  { %v726_v10 = vadd.f32 %v725_v22, %v2435_v37 }
 0x2eb   :  { %v746_v23 = vmax.f32 %v726_v10, 0.0 }
 0x2ed   :  { %v810_v28 = vmul.f32 %v2445_v8, %v746_v23 }
 0x2ef   :  { %v874_v47 = vadd.f32 %v2448_v16, %v810_v28 }
 0x2f0   :  { %v727_v14 = vpop.f32.mrf.mxu3 }
 0x2f1   :  { %v728_v12 = vadd.f32 %v727_v14, %v2429_v29  ;;  %1073 = vadd.xlane.f32.xlu0 %v874_v47  ;;  %v1097_v9 = vmul.f32 %v874_v47, %v874_v47 }
 0x2f3   :  { %v748_v32 = vmax.f32 %v728_v12, 0.0  ;;  %1105 = vadd.xlane.f32.xlu2 %v1097_v9 }
 0x2f5   :  { %v812_v62 = vmul.f32 %v2443_v25, %v748_v32 }
 0x2f7   :  { %v876_v34 = vadd.f32 %v2455_v26, %v812_v62 }
 0x2f8   :  { %v730_v38 = vpop.f32.mrf.mxu3 }
 0x2f9   :  { %v731_v13 = vadd.f32 %v730_v38, %v2423_v2  ;;  %1075 = vadd.xlane.f32.xlu1 %v876_v34  ;;  %903 = vadd.xlane.f32.xlu0 %v887_v33  ;;  %v1098_v41 = vmul.f32 %v876_v34, %v876_v34 }
 0x2fb   :  { %v750_v39 = vmax.f32 %v731_v13, 0.0  ;;  %935 = vadd.xlane.f32.xlu2 %v920_v30 }
 0x2fd   :  { %v814_v17 = vmul.f32 %v2433_v6, %v750_v39 }
 0x2ff   :  { %v878_v58 = vadd.f32 %v2439_v18, %v814_v17 }
 0x300   :  { %v732_v20 = vpop.f32.mrf.mxu3 }
 0x301   :  { %v733_v56 = vadd.f32 %v732_v20, %v2410_v57  ;;  %1107 = vadd.xlane.f32.xlu1 %v1098_v41  ;;  %v1099_v40 = vmul.f32 %v878_v58, %v878_v58 }
 0x303   :  { %v752_v60 = vmax.f32 %v733_v56, 0.0  ;;  %1077 = vadd.xlane.f32.xlu2 %v878_v58 }
 0x305   :  { %v816_v55 = vmul.f32 %v2425_v24, %v752_v60 }
 0x307   :  { %v880_v0 = vadd.f32 %v2437_v1, %v816_v55 }
 0x308   :  { %v735_v46 = vpop.f32.mrf.mxu3 }
 0x309   :  { %v736_v3 = vadd.f32 %v735_v46, %v2402_v52  ;;  %1079 = vadd.xlane.f32.xlu0 %v880_v0  ;;  %v1100_v22 = vmul.f32 %v880_v0, %v880_v0 }
 0x30b   :  { %v754_v4 = vmax.f32 %v736_v3, 0.0  ;;  %1109 = vadd.xlane.f32.xlu2 %v1099_v40 }
 0x30d   :  { %v818_v7 = vmul.f32 %v2413_v59, %v754_v4 }
 0x30f   :  { %v882_v19 = vadd.f32 %v2431_v5, %v818_v7 }
 0x310   :  { %v737_v21 = vpop.f32.mrf.mxu3 }
 0x311   :  { %v738_v10 = vadd.f32 %v737_v21, %v2388_v43  ;;  %1081 = vadd.xlane.f32.xlu1 %v882_v19  ;;  %1111 = vadd.xlane.f32.xlu0 %v1100_v22  ;;  %v1101_v47 = vmul.f32 %v882_v19, %v882_v19 }
 0x313   :  { %v756_v23 = vmax.f32 %v738_v10, 0.0 }
 0x315   :  { %v820_v15 = vmul.f32 %v2406_v11, %v756_v23  ;;  %v707_v11 = vadd.f32 %v2404_v53, %v2402_v52 }
 0x317   :  { %v884_v28 = vadd.f32 %v2416_v61, %v820_v15  ;;  %v753_v38 = vmax.f32 %v707_v11, 0.0 }
 0x318   :  { %v740_v14 = vpop.f32.mrf.mxu3 }
 0x319   :  { %v741_v31 = vadd.f32 %v740_v14, %v2394_v48  ;;  %1083 = vadd.xlane.f32.xlu2 %v884_v28  ;;  %1113 = vadd.xlane.f32.xlu1 %v1101_v47  ;;  %v1102_v32 = vmul.f32 %v884_v28, %v884_v28  ;;  %v704_v48 = vadd.f32 %v2398_v50, %v2410_v57 }
 0x31a   :  { %v817_v39 = vmul.f32 %v2413_v59, %v753_v38  ;;  %v699_v57 = vadd.f32 %v2386_v42, %v2429_v29  ;;  %v697_v59 = vadd.f32 %v2382_v35, %v2435_v37 }
 0x31b   :  { %v758_v12 = vmax.f32 %v741_v31, 0.0  ;;  %v751_v30 = vmax.f32 %v704_v48, 0.0 }
 0x31c   :  { %v881_v50 = vadd.f32 %v2431_v5, %v817_v39 }
 0x31d   :  { %v822_v9 = vmul.f32 %v2396_v49, %v758_v12  ;;  %v815_v52 = vmul.f32 %v2425_v24, %v751_v30 }
 0x31e   :  { %v917_v24 = vmul.f32 %v881_v50, %v881_v50 }
 0x31f   :  { %v886_v62 = vadd.f32 %v2408_v54, %v822_v9 }
 0x320   :  { %v742_v43 = vpop.f32.mrf.mxu3 }
 0x321   :  { %v743_v33 = vadd.f32 %v742_v43, %v2384_v36  ;;  %1115 = vadd.xlane.f32.xlu2 %v1102_v32  ;;  %1085 = vadd.xlane.f32.xlu0 %v886_v62  ;;  %v1103_v13 = vmul.f32 %v886_v62, %v886_v62  ;;  %v702_v36 = vadd.f32 %v2392_v45, %v2423_v2  ;;  %v747_v2 = vmax.f32 %v699_v57, 0.0 }
 0x323   :  { %v760_v61 = vmax.f32 %v743_v33, 0.0  ;;  %v749_v53 = vmax.f32 %v702_v36, 0.0  ;;  %v811_v41 = vmul.f32 %v2443_v25, %v747_v2 }
 0x325   :  { %v824_v34 = vmul.f32 %v2390_v44, %v760_v61  ;;  %v918_v44 = vmul.f32 %v2419_v63, %v2419_v63  ;;  %v813_v45 = vmul.f32 %v2433_v6, %v749_v53  ;;  %v745_v63 = vmax.f32 %v697_v59, 0.0 }
 0x326   :  { %v875_v29 = vadd.f32 %v2455_v26, %v811_v41 }
 0x327   :  { %v888_v49 = vadd.f32 %v2400_v51, %v824_v34  ;;  %v879_v51 = vadd.f32 %v2437_v1, %v815_v52  ;;  %v877_v17 = vadd.f32 %v2439_v18, %v813_v45  ;;  %v809_v1 = vmul.f32 %v2445_v8, %v745_v63 }
 0x328   :  { %v914_v37 = vmul.f32 %v875_v29, %v875_v29 }
 0x329   :  { %1087 = vadd.xlane.f32.xlu2 %v888_v49  ;;  %1117 = vadd.xlane.f32.xlu0 %v1103_v13  ;;  %v1104_v54 = vmul.f32 %v888_v49, %v888_v49  ;;  %v916_v5 = vmul.f32 %v879_v51, %v879_v51  ;;  %v915_v42 = vmul.f32 %v877_v17, %v877_v17 }
 0x32a   :  { %v873_v35 = vadd.f32 %v2448_v16, %v809_v1 }
 0x32b   :  { %1119 = vadd.xlane.f32.xlu1 %v1104_v54 }
 0x32c   :  { %v913_v18 = vmul.f32 %v873_v35, %v873_v35 }
 0x331   :  { %931 = vadd.xlane.f32.xlu0 %v918_v44  ;;  %897 = vadd.xlane.f32.xlu2 %v881_v50 }
 0x333   :  { %895 = vadd.xlane.f32.xlu1 %v879_v51 }
 0x339   :  { %929 = vadd.xlane.f32.xlu2 %v917_v24  ;;  %893 = vadd.xlane.f32.xlu0 %v877_v17 }
 0x33b   :  { %927 = vadd.xlane.f32.xlu1 %v916_v5 }
 0x340   :  { %v2510_v56 = vpop.xlane.xlu0 %899 }
 0x341   :  { %925 = vadd.xlane.f32.xlu0 %v915_v42  ;;  %891 = vadd.xlane.f32.xlu2 %v875_v29 }
 0x343   :  { %889 = vadd.xlane.f32.xlu1 %v873_v35 }
 0x348   :  { %v902_v6 = vpop.xlane.xlu1 %901 }
 0x349   :  { %923 = vadd.xlane.f32.xlu2 %v914_v37  ;;  %921 = vadd.xlane.f32.xlu0 %v913_v18  ;;  %v2499_v20 = vmul.f32 %v902_v6, %v1946_v27 }
 0x34b   :  { %v2503_v8 = vmul.f32 %v2499_v20, %v2499_v20 }
 0x350   :  { %v934_v25 = vpop.xlane.xlu1 %933 }
 0x351   :  { %v2506_v26 = vmul.f32 %v934_v25, %v1946_v27 }
 0x353   :  { %v959_v16 = vsub.f32 %v2506_v26, %v2503_v8 }
 0x364   :  { %v1074_v58 = vpop.xlane.xlu0 %1073 }
 0x365   :  { %v2525_v10 = vmul.f32 %v1074_v58, %v1946_v27 }
 0x366   :  { %v1106_v60 = vpop.xlane.xlu2 %1105 }
 0x367   :  { %v1129_v28 = vmul.f32 %v2525_v10, %v2525_v10  ;;  %v1121_v47 = vmul.f32 %v1106_v60, %v1946_v27 }
 0x369   :  { %v1137_v62 = vsub.f32 %v1121_v47, %v1129_v28 }
 0x36b   :  { %v1145_v48 = vmax.f32 %v1137_v62, 0.0 }
 0x36c   :  { %v904_v55 = vpop.xlane.xlu0 %903  ;;  %v1076_v7 = vpop.xlane.xlu1 %1075 }
 0x36d   :  { %v2513_v0 = vmul.f32 %v904_v55, %v1946_v27  ;;  %v2550_v54 = vmul.f32 %v1076_v7, %v1946_v27  ;;  %v2554_v52 = vadd.f32 1e-05, %v1145_v48 }
 0x36e   :  { %v936_v46 = vpop.xlane.xlu2 %935 }
 0x36f   :  { %v2517_v3 = vmul.f32 %v2513_v0, %v2513_v0  ;;  %v2520_v40 = vmul.f32 %v936_v46, %v1946_v27  ;;  %v1130_v57 = vmul.f32 %v2550_v54, %v2550_v54  ;;  %vm1168_vm14 = vcmp.eq.f32.partialorder %v2554_v52, inf }
 0x370   :  { %vm1170_vm1 = vcmp.eq.f32.partialorder %v2554_v52, 0.0 }
 0x371   :  { %v960_v4 = vsub.f32 %v2520_v40, %v2517_v3 }
 0x374   :  { %v1108_v22 = vpop.xlane.xlu1 %1107 }
 0x375   :  { %v1122_v53 = vmul.f32 %v1108_v22, %v1946_v27 }
 0x376   :  { %v1078_v19 = vpop.xlane.xlu2 %1077 }
 0x377   :  { %v2540_v11 = vmul.f32 %v1078_v19, %v1946_v27  ;;  %v1138_v2 = vsub.f32 %v1122_v53, %v1130_v57 }
 0x379   :  { %v1131_v36 = vmul.f32 %v2540_v11, %v2540_v11  ;;  %v1146_v35 = vmax.f32 %v1138_v2, 0.0 }
 0x37b   :  { %v2579_v7 = vadd.f32 1e-05, %v1146_v35 }
 0x37c   :  { %v1080_v21 = vpop.xlane.xlu0 %1079 }
 0x37d   :  { %v2528_v23 = vmul.f32 %v1080_v21, %v1946_v27  ;;  %vm1180_vm7 = vcmp.eq.f32.partialorder %v2579_v7, inf }
 0x37e   :  { %v1110_v15 = vpop.xlane.xlu2 %1109 }
 0x37f   :  { %v1132_v12 = vmul.f32 %v2528_v23, %v2528_v23  ;;  %v1123_v34 = vmul.f32 %v1110_v15, %v1946_v27 }
 0x381   :  { %v1139_v44 = vsub.f32 %v1123_v34, %v1131_v36 }
 0x383   :  { %v1147_v24 = vmax.f32 %v1139_v44, 0.0 }
 0x384   :  { %v1082_v14 = vpop.xlane.xlu1 %1081  ;;  %v1112_v31 = vpop.xlane.xlu0 %1111 }
 0x385   :  { %v1124_v9 = vmul.f32 %v1112_v31, %v1946_v27  ;;  %v2537_v43 = vmul.f32 %v1082_v14, %v1946_v27  ;;  %v2570_v6 = vadd.f32 1e-05, %v1147_v24 }
 0x387   :  { %v1140_v32 = vsub.f32 %v1124_v9, %v1132_v12  ;;  %v1133_v13 = vmul.f32 %v2537_v43, %v2537_v43  ;;  %vm1192_vm5 = vcmp.eq.f32.partialorder %v2570_v6, inf  ;;  %vm1194_vm6 = vcmp.eq.f32.partialorder %v2570_v6, 0.0 }
 0x389   :  { %v1148_v33 = vmax.f32 %v1140_v32, 0.0 }
 0x38b   :  { %v2542_v61 = vadd.f32 1e-05, %v1148_v33 }
 0x38c   :  { %v1084_v38 = vpop.xlane.xlu2 %1083  ;;  %v1114_v49 = vpop.xlane.xlu1 %1113 }
 0x38d   :  { %v1125_v30 = vmul.f32 %v1114_v49, %v1946_v27  ;;  %1742 = vrsqrt.f32 %v2542_v61  ;;  %v2558_v50 = vmul.f32 %v1084_v38, %v1946_v27  ;;  %vm1204_vm8 = vcmp.eq.f32.partialorder %v2542_v61, inf }
 0x38e   :  { %1744 = vrsqrt.f32 %v2554_v52  ;;  %v1207_v34 = vand.u32 2147483648, %v2542_v61  ;;  %vm1206_vm9 = vcmp.eq.f32.partialorder %v2542_v61, 0.0 }
 0x38f   :  { %v1141_v39 = vsub.f32 %v1125_v30, %v1133_v13  ;;  %v1134_v41 = vmul.f32 %v2558_v50, %v2558_v50 }
 0x391   :  { %v1149_v51 = vmax.f32 %v1141_v39, 0.0 }
 0x393   :  { %v1743_v45 = vpop.eup %1742  ;;  %v2562_v59 = vadd.f32 1e-05, %v1149_v51 }
 0x394   :  { %v1116_v17 = vpop.xlane.xlu2 %1115  ;;  %v1086_v63 = vpop.xlane.xlu0 %1085  ;;  %v1198_v5 = vmul.f32 %v1743_v45, %v2542_v61 }
 0x395   :  { %v1126_v1 = vmul.f32 %v1116_v17, %v1946_v27  ;;  %1746 = vrsqrt.f32 %v2562_v59  ;;  %v2573_v25 = vmul.f32 %v1086_v63, %v1946_v27  ;;  %v2575_v58 = vpop.eup %1744  ;;  %vm1216_vm10 = vcmp.eq.f32.partialorder %v2562_v59, inf }
 0x396   :  { %v1199_v42 = vmul.f32 %v1743_v45, %v1198_v5  ;;  %1748 = vrsqrt.f32 %v2570_v6  ;;  %v1162_v32 = vmul.f32 %v2575_v58, %v2554_v52  ;;  %vm1218_vm11 = vcmp.eq.f32.partialorder %v2562_v59, 0.0 }
 0x397   :  { %v1142_v29 = vsub.f32 %v1126_v1, %v1134_v41  ;;  %v1135_v28 = vmul.f32 %v2573_v25, %v2573_v25 }
 0x398   :  { %v1200_v37 = vmul.f32 0.5, %v1199_v42  ;;  %v1163_v44 = vmul.f32 %v2575_v58, %v1162_v32  ;;  %v1219_v42 = vand.u32 2147483648, %v2562_v59 }
 0x399   :  { %v1150_v18 = vmax.f32 %v1142_v29, 0.0 }
 0x39a   :  { %v1201_v60 = vsub.f32 1.5, %v1200_v37  ;;  %v1164_v41 = vmul.f32 0.5, %v1163_v44 }
 0x39b   :  { %v1747_v55 = vpop.eup %1746  ;;  %v2577_v46 = vadd.f32 1e-05, %v1150_v18 }
 0x39c   :  { %v1088_v19 = vpop.xlane.xlu2 %1087  ;;  %v1118_v22 = vpop.xlane.xlu0 %1117  ;;  %v1202_v21 = vmul.f32 %v1743_v45, %v1201_v60  ;;  %v1210_v15 = vmul.f32 %v1747_v55, %v2562_v59 }
 0x39d   :  { %v2586_v47 = vmul.f32 %v1088_v19, %v1946_v27  ;;  %v1127_v14 = vmul.f32 %v1118_v22, %v1946_v27  ;;  %1750 = vrsqrt.f32 %v2577_v46  ;;  %v1749_v39 = vpop.eup %1748  ;;  %vm1228_vm12 = vcmp.eq.f32.partialorder %v2577_v46, inf }
 0x39e   :  { %v1120_v31 = vpop.xlane.xlu1 %1119  ;;  %v1203_v12 = vmul.f32 %v1202_v21, %v2542_v61  ;;  %v1211_v9 = vmul.f32 %v1747_v55, %v1210_v15  ;;  %1752 = vrsqrt.f32 %v2579_v7  ;;  %v1186_v1 = vmul.f32 %v1749_v39, %v2570_v6 }
 0x39f   :  { %v1136_v62 = vmul.f32 %v2586_v47, %v2586_v47  ;;  %v1143_v33 = vsub.f32 %v1127_v14, %v1135_v28  ;;  %v1128_v48 = vmul.f32 %v1120_v31, %v1946_v27  ;;  %v1231_v32 = vand.u32 2147483648, %v2577_v46 }
 0x3a0   :  { %v1205_v38 = vsel %vm1204_vm8, %v2542_v61, %v1203_v12  ;;  %v1212_v49 = vmul.f32 0.5, %v1211_v9  ;;  %v1187_v19 = vmul.f32 %v1749_v39, %v1186_v1  ;;  %vm1230_vm13 = vcmp.eq.f32.partialorder %v2577_v46, 0.0 }
 0x3a1   :  { %v1151_v13 = vmax.f32 %v1143_v33, 0.0  ;;  %v1144_v30 = vsub.f32 %v1128_v48, %v1136_v62  ;;  %v1208_v36 = vsel %vm1206_vm9, %v1207_v34, %v1205_v38  ;;  %vm1182_vm8 = vcmp.eq.f32.partialorder %v2579_v7, 0.0 }
 0x3a2   :  { %1295 = vrot.lane.b32.xlu0 %v1208_v36, %s1802_s25  ;;  %v1213_v53 = vsub.f32 1.5, %v1212_v49  ;;  %v1188_v9 = vmul.f32 0.5, %v1187_v19 }
 0x3a3   :  { %v1751_v51 = vpop.eup %1750  ;;  %v1159_v57 = vadd.f32 1e-05, %v1151_v13  ;;  %v1152_v45 = vmax.f32 %v1144_v30, 0.0 }
 0x3a4   :  { %v1214_v2 = vmul.f32 %v1747_v55, %v1213_v53  ;;  %v1222_v24 = vmul.f32 %v1751_v51, %v2577_v46  ;;  %v1753_v61 = vpop.eup %1752  ;;  %v1165_v55 = vsub.f32 1.5, %v1164_v41  ;;  %v1189_v30 = vsub.f32 1.5, %v1188_v9 }
 0x3a5   :  { %v2604_v17 = vadd.f32 1e-05, %v1152_v45  ;;  %1754 = vrsqrt.f32 %v1159_v57  ;;  %v1174_v18 = vmul.f32 %v1753_v61, %v2579_v7  ;;  %vm1240_vm15 = vcmp.eq.f32.partialorder %v1159_v57, inf }
 0x3a6   :  { %v1215_v63 = vmul.f32 %v1214_v2, %v2562_v59  ;;  %v1223_v5 = vmul.f32 %v1751_v51, %v1222_v24  ;;  %v1243_v24 = vand.u32 2147483648, %v1159_v57  ;;  %vm1242_vm0 = vcmp.eq.f32.partialorder %v1159_v57, 0.0 }
 0x3a7   :  { %1756 = vrsqrt.f32 %v2604_v17  ;;  %v1175_v28 = vmul.f32 %v1753_v61, %v1174_v18  ;;  %vm1252_vm2 = vcmp.eq.f32.partialorder %v2604_v17, inf  ;;  %vm1254_vm3 = vcmp.eq.f32.partialorder %v2604_v17, 0.0 }
 0x3a8   :  { %v1217_v29 = vsel %vm1216_vm10, %v2562_v59, %v1215_v63  ;;  %v1224_v35 = vmul.f32 0.5, %v1223_v5  ;;  %v1166_v59 = vmul.f32 %v2575_v58, %v1165_v55  ;;  %v1171_v63 = vand.u32 2147483648, %v2554_v52 }
 0x3a9   :  { %v1220_v37 = vsel %vm1218_vm11, %v1219_v42, %v1217_v29  ;;  %v1176_v49 = vmul.f32 0.5, %v1175_v28 }
 0x3aa   :  { %1297 = vrot.lane.b32.xlu1 %v1220_v37, %s1802_s25  ;;  %v1225_v60 = vsub.f32 1.5, %v1224_v35  ;;  %v1167_v58 = vmul.f32 %v1166_v59, %v2554_v52 }
 0x3ab   :  { %v1755_v22 = vpop.eup %1754 }
 0x3ac   :  { %v1226_v21 = vmul.f32 %v1751_v51, %v1225_v60  ;;  %v1234_v15 = vmul.f32 %v1755_v22, %v1159_v57  ;;  %v1177_v51 = vsub.f32 1.5, %v1176_v49  ;;  %v1169_v2 = vsel %vm1168_vm14, %v2554_v52, %v1167_v58 }
 0x3ad   :  { %v1757_v14 = vpop.eup %1756  ;;  %v1172_v42 = vsel %vm1170_vm1, %v1171_v63, %v1169_v2  ;;  %v1195_v60 = vand.u32 2147483648, %v2570_v6 }
 0x3ae   :  { %v1227_v31 = vmul.f32 %v1226_v21, %v2577_v46  ;;  %v1235_v12 = vmul.f32 %v1755_v22, %v1234_v15  ;;  %v1246_v62 = vmul.f32 %v1757_v14, %v2604_v17  ;;  %v1178_v35 = vmul.f32 %v1753_v61, %v1177_v51 }
 0x3b0   :  { %v1229_v33 = vsel %vm1228_vm12, %v2577_v46, %v1227_v31  ;;  %v1236_v48 = vmul.f32 0.5, %v1235_v12  ;;  %v1247_v38 = vmul.f32 %v1757_v14, %v1246_v62  ;;  %v1190_v46 = vmul.f32 %v1749_v39, %v1189_v30 }
 0x3b1   :  { %v1232_v34 = vsel %vm1230_vm13, %v1231_v32, %v1229_v33  ;;  %v1255_v39 = vand.u32 2147483648, %v2604_v17  ;;  %v968_v31 = vmax.f32 %v960_v4, 0.0  ;;  %v967_v32 = vmax.f32 %v959_v16, 0.0 }
 0x3b2   :  { %1299 = vrot.lane.b32.xlu0 %v1232_v34, %s1802_s25  ;;  %v1237_v13 = vsub.f32 1.5, %v1236_v48  ;;  %v1248_v36 = vmul.f32 0.5, %v1247_v38  ;;  %v1191_v37 = vmul.f32 %v1190_v46, %v2570_v6 }
 0x3b3   :  { %v2696_v34 = vadd.f32 1e-05, %v968_v31  ;;  %v2704_v58 = vadd.f32 1e-05, %v967_v32 }
 0x3b4   :  { %v1238_v53 = vmul.f32 %v1755_v22, %v1237_v13  ;;  %v1249_v44 = vsub.f32 1.5, %v1248_v36  ;;  %v1193_v61 = vsel %vm1192_vm5, %v2570_v6, %v1191_v37  ;;  %v932_v6 = vpop.xlane.xlu0 %931  ;;  %v1384_v37 = vld [vmem:[%s2883_s7 + $0x78] sm:$0xff] }
 0x3b5   :  { %v1196_v55 = vsel %vm1194_vm6, %v1195_v60, %v1193_v61  ;;  %1758 = vrsqrt.f32 %v2696_v34  ;;  %1389 = vmatpush.msra.mxu2 %v1384_v37  ;;  %vm1068_vm9 = vcmp.eq.f32.partialorder %v2696_v34, inf  ;;  %vm1056_vm10 = vcmp.eq.f32.partialorder %v2704_v58, inf }
 0x3b6   :  { %v1239_v45 = vmul.f32 %v1238_v53, %v1159_v57  ;;  %v1250_v5 = vmul.f32 %v1757_v14, %v1249_v44  ;;  %1760 = vrsqrt.f32 %v2704_v58  ;;  %vm1070_vm11 = vcmp.eq.f32.partialorder %v2696_v34, 0.0 }
 0x3b7   :  { %vm1058_vm12 = vcmp.eq.f32.partialorder %v2704_v58, 0.0 }
 0x3b8   :  { %v1241_v41 = vsel %vm1240_vm15, %v1159_v57, %v1239_v45  ;;  %v1251_v29 = vmul.f32 %v1250_v5, %v2604_v17  ;;  %v1179_v57 = vmul.f32 %v1178_v35, %v2579_v7 }
 0x3b9   :  { %v1244_v1 = vsel %vm1242_vm0, %v1243_v24, %v1241_v41 }
 0x3ba   :  { %1301 = vrot.lane.b32.xlu2 %v1244_v1, %s1802_s25  ;;  %1289 = vrot.lane.b32.xlu0 %v1172_v42, %s1802_s25  ;;  %v1253_v18 = vsel %vm1252_vm2, %v2604_v17, %v1251_v29  ;;  %v1181_v19 = vsel %vm1180_vm7, %v2579_v7, %v1179_v57  ;;  %v1183_v17 = vand.u32 2147483648, %v2579_v7  ;;  %v896_v7 = vpop.xlane.xlu1 %895 }
 0x3bb   :  { %v1256_v52 = vsel %vm1254_vm3, %v1255_v39, %v1253_v18 }
 0x3bc   :  { %1303 = vrot.lane.b32.xlu1 %v1256_v52, %s1802_s25  ;;  %v1184_v22 = vsel %vm1182_vm8, %v1183_v17, %v1181_v19 }
 0x3c2   :  { %1293 = vrot.lane.b32.xlu2 %v1196_v55, %s1802_s25  ;;  %1283 = vrot.lane.b32.xlu0 %v2558_v50, %s1802_s25  ;;  %v898_v50 = vpop.xlane.xlu2 %897  ;;  %v928_v21 = vpop.xlane.xlu1 %927  ;;  %v1383_v55 = vld [vmem:[%s2883_s7 + $0x70] sm:$0xff] }
 0x3c3   :  { %v2670_v28 = vmul.f32 %v898_v50, %v1946_v27  ;;  %v940_v9 = vmul.f32 %v928_v21, %v1946_v27  ;;  %1390 = vmatpush.msra.mxu2 %v1383_v55 }
 0x3c4   :  { %1291 = vrot.lane.b32.xlu1 %v1184_v22, %s1802_s25 }
 0x3c5   :  { %v949_v12 = vmul.f32 %v2670_v28, %v2670_v28 }
 0x3ca   :  { %1287 = vrot.lane.b32.xlu2 %v2586_v47, %s1802_s25  ;;  %1277 = vrot.lane.b32.xlu0 %v2540_v11, %s1802_s25  ;;  %v930_v47 = vpop.xlane.xlu2 %929  ;;  %v894_v11 = vpop.xlane.xlu0 %893 }
 0x3cb   :  { %v941_v14 = vmul.f32 %v930_v47, %v1946_v27  ;;  %v2684_v59 = vmul.f32 %v894_v11, %v1946_v27  ;;  %v890_v62 = vpop.xlane.xlu1 %889  ;;  %v1382_v47 = vld [vmem:[%s2883_s7 + $0x68] sm:$0xff] }
 0x3cc   :  { %1285 = vrot.lane.b32.xlu1 %v2573_v25, %s1802_s25  ;;  %v2666_v25 = vmul.f32 %v2510_v56, %v1946_v27  ;;  %v2701_v26 = vmul.f32 %v890_v62, %v1946_v27  ;;  %1391 = vmatpush.msra.mxu2 %v1382_v47 }
 0x3cd   :  { %v957_v3 = vsub.f32 %v941_v14, %v949_v12  ;;  %v947_v13 = vmul.f32 %v2684_v59, %v2684_v59 }
 0x3ce   :  { %v945_v2 = vmul.f32 %v2701_v26, %v2701_v26 }
 0x3cf   :  { %v965_v30 = vmax.f32 %v957_v3, 0.0 }
 0x3d1   :  { %v2715_v24 = vadd.f32 1e-05, %v965_v30 }
 0x3d2   :  { %1281 = vrot.lane.b32.xlu2 %v2537_v43, %s1802_s25  ;;  %v892_v15 = vpop.xlane.xlu2 %891  ;;  %v926_v43 = vpop.xlane.xlu0 %925 }
 0x3d3   :  { %v939_v40 = vmul.f32 %v926_v43, %v1946_v27  ;;  %v2694_v4 = vmul.f32 %v892_v15, %v1946_v27  ;;  %vm1032_vm15 = vcmp.eq.f32.partialorder %v2715_v24, inf  ;;  %vm1034_vm1 = vcmp.eq.f32.partialorder %v2715_v24, 0.0 }
 0x3d4   :  { %1279 = vrot.lane.b32.xlu1 %v2528_v23, %s1802_s25  ;;  %v942_v23 = vmul.f32 %v932_v6, %v1946_v27 }
 0x3d5   :  { %v955_v36 = vsub.f32 %v939_v40, %v947_v13  ;;  %v946_v53 = vmul.f32 %v2694_v4, %v2694_v4  ;;  %v1380_v13 = vld [vmem:[%s2883_s7 + $0x58] sm:$0xff] }
 0x3d7   :  { %v963_v63 = vmax.f32 %v955_v36, 0.0 }
 0x3d9   :  { %v2720_v42 = vadd.f32 1e-05, %v963_v63  ;;  %v1379_v63 = vld [vmem:[%s2883_s7 + $0x50] sm:$0xff] }
 0x3da   :  { %1275 = vrot.lane.b32.xlu2 %v2550_v54, %s1802_s25  ;;  %v2675_v54 = vmul.f32 %v896_v7, %v1946_v27  ;;  %v924_v33 = vpop.xlane.xlu2 %923  ;;  %v922_v49 = vpop.xlane.xlu0 %921 }
 0x3db   :  { %v938_v16 = vmul.f32 %v924_v33, %v1946_v27  ;;  %v937_v44 = vmul.f32 %v922_v49, %v1946_v27  ;;  %v1759_v27 = vpop.eup %1758  ;;  %vm1008_vm2 = vcmp.eq.f32.partialorder %v2720_v42, inf  ;;  %vm1010_vm6 = vcmp.eq.f32.partialorder %v2720_v42, 0.0 }
 0x3dc   :  { %1273 = vrot.lane.b32.xlu1 %v2525_v10, %s1802_s25  ;;  %v950_v10 = vmul.f32 %v2666_v25, %v2666_v25  ;;  %v948_v48 = vmul.f32 %v2675_v54, %v2675_v54  ;;  %v1761_v35 = vpop.eup %1760  ;;  %v1062_v18 = vmul.f32 %v1759_v27, %v2696_v34 }
 0x3dd   :  { %v954_v46 = vsub.f32 %v938_v16, %v946_v53  ;;  %v953_v5 = vsub.f32 %v937_v44, %v945_v2  ;;  %v1050_v61 = vmul.f32 %v1761_v35, %v2704_v58 }
 0x3de   :  { %v958_v56 = vsub.f32 %v942_v23, %v950_v10  ;;  %v956_v8 = vsub.f32 %v940_v9, %v948_v48  ;;  %v1063_v19 = vmul.f32 %v1759_v27, %v1062_v18 }
 0x3df   :  { %v962_v1 = vmax.f32 %v954_v46, 0.0  ;;  %v961_v29 = vmax.f32 %v953_v5, 0.0  ;;  %v1051_v50 = vmul.f32 %v1761_v35, %v1050_v61 }
 0x3e0   :  { %v966_v38 = vmax.f32 %v958_v56, 0.0  ;;  %v964_v45 = vmax.f32 %v956_v8, 0.0  ;;  %v1064_v11 = vmul.f32 0.5, %v1063_v19  ;;  %v1381_v56 = vld [vmem:[%s2883_s7 + $0x60] sm:$0xff] }
 0x3e1   :  { %v2723_v39 = vadd.f32 1e-05, %v962_v1  ;;  %v2730_v57 = vadd.f32 1e-05, %v961_v29  ;;  %v1052_v23 = vmul.f32 0.5, %v1051_v50  ;;  %1392 = vmatpush.msra.mxu2 %v1381_v56  ;;  %v1059_v56 = vand.u32 2147483648, %v2704_v58 }
 0x3e2   :  { %v2710_v51 = vadd.f32 1e-05, %v966_v38  ;;  %v2717_v41 = vadd.f32 1e-05, %v964_v45  ;;  %v1065_v12 = vsub.f32 1.5, %v1064_v11 }
 0x3e3   :  { %v1053_v3 = vsub.f32 1.5, %v1052_v23  ;;  %1393 = vmatpush.msra.mxu2 %v1380_v13  ;;  %vm996_vm5 = vcmp.eq.f32.partialorder %v2723_v39, inf  ;;  %vm984_vm7 = vcmp.eq.f32.partialorder %v2730_v57, inf  ;;  %vm998_vm8 = vcmp.eq.f32.partialorder %v2723_v39, 0.0 }
 0x3e4   :  { %1762 = vrsqrt.f32 %v2710_v51  ;;  %v1066_v8 = vmul.f32 %v1759_v27, %v1065_v12  ;;  %vm1044_vm13 = vcmp.eq.f32.partialorder %v2710_v51, inf  ;;  %vm1046_vm14 = vcmp.eq.f32.partialorder %v2710_v51, 0.0 }
 0x3e5   :  { %1764 = vrsqrt.f32 %v2715_v24  ;;  %v1054_v53 = vmul.f32 %v1761_v35, %v1053_v3  ;;  %1394 = vmatpush.msra.mxu2 %v1379_v63  ;;  %vm1020_vm0 = vcmp.eq.f32.partialorder %v2717_v41, inf  ;;  %vm1022_vm3 = vcmp.eq.f32.partialorder %v2717_v41, 0.0 }
 0x3e6   :  { %1766 = vrsqrt.f32 %v2717_v41  ;;  %v1067_v5 = vmul.f32 %v1066_v8, %v2696_v34  ;;  %v1035_v8 = vand.u32 2147483648, %v2715_v24 }
 0x3e7   :  { %1768 = vrsqrt.f32 %v2720_v42  ;;  %v1055_v18 = vmul.f32 %v1054_v53, %v2704_v58  ;;  %v1023_v53 = vand.u32 2147483648, %v2717_v41 }
 0x3e8   :  { %1770 = vrsqrt.f32 %v2723_v39 }
 0x3e9   :  { %1772 = vrsqrt.f32 %v2730_v57  ;;  %v1057_v11 = vsel %vm1056_vm10, %v2704_v58, %v1055_v18  ;;  %v1047_v58 = vand.u32 2147483648, %v2710_v51  ;;  %v1372_v18 = vld [vmem:[%s2883_s7 + $0x18] sm:$0xff] }
 0x3ea   :  { %v1763_v52 = vpop.eup %1762 }
 0x3eb   :  { %v1765_v60 = vpop.eup %1764  ;;  %v1038_v17 = vmul.f32 %v1763_v52, %v2710_v51 }
 0x3ec   :  { %v1767_v22 = vpop.eup %1766  ;;  %v1026_v6 = vmul.f32 %v1765_v60, %v2715_v24 }
 0x3ed   :  { %v1769_v7 = vpop.eup %1768  ;;  %v1039_v21 = vmul.f32 %v1763_v52, %v1038_v17  ;;  %v1014_v15 = vmul.f32 %v1767_v22, %v2717_v41  ;;  %v1378_v17 = vld [vmem:[%s2883_s7 + $0x48] sm:$0xff] }
 0x3ee   :  { %v2745_v43 = vpop.eup %1770  ;;  %v1027_v10 = vmul.f32 %v1765_v60, %v1026_v6  ;;  %v1002_v14 = vmul.f32 %v1769_v7, %v2720_v42  ;;  %1395 = vmatpush.msra.mxu2 %v1378_v17 }
 0x3ef   :  { %v2748_v31 = vpop.eup %1772  ;;  %v1040_v9 = vmul.f32 0.5, %v1039_v21  ;;  %v1015_v32 = vmul.f32 %v1767_v22, %v1014_v15  ;;  %v990_v62 = vmul.f32 %v2745_v43, %v2723_v39 }
 0x3f0   :  { %v1028_v40 = vmul.f32 0.5, %v1027_v10  ;;  %v1003_v38 = vmul.f32 %v1769_v7, %v1002_v14  ;;  %v978_v49 = vmul.f32 %v2748_v31, %v2730_v57 }
 0x3f1   :  { %v1041_v16 = vsub.f32 1.5, %v1040_v9  ;;  %v1016_v30 = vmul.f32 0.5, %v1015_v32  ;;  %v991_v36 = vmul.f32 %v2745_v43, %v990_v62  ;;  %v1060_v32 = vsel %vm1058_vm12, %v1059_v56, %v1057_v11 }
 0x3f2   :  { %v1029_v44 = vsub.f32 1.5, %v1028_v40  ;;  %v1004_v45 = vmul.f32 0.5, %v1003_v38  ;;  %v979_v2 = vmul.f32 %v2748_v31, %v978_v49 }
 0x3f3   :  { %v1042_v1 = vmul.f32 %v1763_v52, %v1041_v16  ;;  %v1017_v27 = vsub.f32 1.5, %v1016_v30  ;;  %v992_v29 = vmul.f32 0.5, %v991_v36  ;;  %v1069_v52 = vsel %vm1068_vm9, %v2696_v34, %v1067_v5 }
 0x3f4   :  { %v1030_v35 = vmul.f32 %v1765_v60, %v1029_v44  ;;  %v1005_v61 = vsub.f32 1.5, %v1004_v45  ;;  %v980_v55 = vmul.f32 0.5, %v979_v2  ;;  %v1071_v60 = vand.u32 2147483648, %v2696_v34  ;;  %v1374_v44 = vld [vmem:[%s2883_s7 + $0x28] sm:$0xff] }
 0x3f5   :  { %v1043_v50 = vmul.f32 %v1042_v1, %v2710_v51  ;;  %v1018_v6 = vmul.f32 %v1767_v22, %v1017_v27  ;;  %v993_v47 = vsub.f32 1.5, %v992_v29  ;;  %v1377_v22 = vld [vmem:[%s2883_s7 + $0x40] sm:$0xff]  ;;  %v1011_v1 = vand.u32 2147483648, %v2720_v42 }
 0x3f6   :  { %v1031_v21 = vmul.f32 %v1030_v35, %v2715_v24  ;;  %v1006_v15 = vmul.f32 %v1769_v7, %v1005_v61  ;;  %v981_v23 = vsub.f32 1.5, %v980_v55  ;;  %v1072_v14 = vsel %vm1070_vm11, %v1071_v60, %v1069_v52  ;;  %1396 = vmatpush.msra.mxu2 %v1377_v22  ;;  %v1373_v27 = vld [vmem:[%s2883_s7 + $0x20] sm:$0xff]  ;;  %v1371_v55 = vld [vmem:[%s2883_s7 + $0x10] sm:$0xff] }
 0x3f7   :  { %v1045_v34 = vsel %vm1044_vm13, %v2710_v51, %v1043_v50  ;;  %v1019_v9 = vmul.f32 %v1018_v6, %v2717_v41  ;;  %v994_v7 = vmul.f32 %v2745_v43, %v993_v47  ;;  %v1376_v43 = vld [vmem:[%s2883_s7 + $0x38] sm:$0xff]  ;;  %v1375_v51 = vld [vmem:[%s2883_s7 + $0x30] sm:$0xff]  ;;  %v987_v61 = vand.u32 2147483648, %v2730_v57  ;;  %v1369_v60 = vld [vmem:[%s2883_s7] sm:$0xff] }
 0x3f8   :  { %v1033_v3 = vsel %vm1032_vm15, %v2715_v24, %v1031_v21  ;;  %v1007_v40 = vmul.f32 %v1006_v15, %v2720_v42  ;;  %v982_v38 = vmul.f32 %v2748_v31, %v981_v23  ;;  %v1048_v13 = vsel %vm1046_vm14, %v1047_v58, %v1045_v34 }
 0x3f9   :  { %v1021_v31 = vsel %vm1020_vm0, %v2717_v41, %v1019_v9  ;;  %v995_v16 = vmul.f32 %v994_v7, %v2723_v39  ;;  %v1036_v36 = vsel %vm1034_vm1, %v1035_v8, %v1033_v3  ;;  %vm986_vm9 = vcmp.eq.f32.partialorder %v2730_v57, 0.0 }
 0x3fa   :  { %v1009_v24 = vsel %vm1008_vm2, %v2720_v42, %v1007_v40  ;;  %v983_v2 = vmul.f32 %v982_v38, %v2730_v57  ;;  %v1024_v5 = vsel %vm1022_vm3, %v1023_v53, %v1021_v31 }
 0x3fb   :  { %v997_v41 = vsel %vm996_vm5, %v2723_v39, %v995_v16  ;;  %v1012_v29 = vsel %vm1010_vm6, %v1011_v1, %v1009_v24 }
 0x3fc   :  { %v985_v42 = vsel %vm984_vm7, %v2730_v57, %v983_v2 }
 0x414   :  { %v1302_v33 = vpop.permute.xlu2 %1301  ;;  %v2755_v48 = vpop.permute.xlu0 %1295 }
 0x415   :  { %v1335_v62 = vsel %vm141_vm4, %v1060_v32, %v1302_v33 }
 0x41c   :  { %v2764_v46 = vpop.permute.xlu1 %1297  ;;  %v2771_v19 = vpop.permute.xlu2 %1293 }
 0x41d   :  { %v1333_v45 = vsel %vm141_vm4, %v1036_v36, %v2764_v46  ;;  %v1332_v46 = vsel %vm141_vm4, %v1024_v5, %v2755_v48  ;;  %v1331_v35 = vsel %vm141_vm4, %v1012_v29, %v2771_v19  ;;  %v988_v19 = vsel %vm986_vm9, %v987_v61, %v985_v42 }
 0x424   :  { %v1300_v37 = vpop.permute.xlu0 %1299  ;;  %v1288_v30 = vpop.permute.xlu2 %1287 }
 0x425   :  { %v1334_v33 = vsel %vm141_vm4, %v1048_v13, %v1300_v37  ;;  %v999_v37 = vand.u32 2147483648, %v2723_v39  ;;  %v1370_v39 = vld [vmem:[%s2883_s7 + $0x8] sm:$0xff]  ;;  %v1328_v57 = vsel %vm141_vm4, %v2513_v0, %v1288_v30 }
 0x427   :  { %v1000_v48 = vsel %vm998_vm8, %v999_v37, %v997_v41 }
 0x42c   :  { %v1290_v49 = vpop.permute.xlu0 %1289  ;;  %v1282_v6 = vpop.permute.xlu2 %1281 }
 0x42d   :  { %v1329_v50 = vsel %vm141_vm4, %v988_v19, %v1290_v49  ;;  %v1325_v15 = vsel %vm141_vm4, %v2670_v28, %v1282_v6 }
 0x42e   :  { %v1304_v10 = vpop.permute.xlu1 %1303 }
 0x42f   :  { %v1336_v12 = vsel %vm141_vm4, %v1072_v14, %v1304_v10 }
 0x430   :  { %1613 = vmatpush.lsf.msrb.mxu2 %v1336_v12 }
 0x432   :  { %1614 = vmatpush.lsf.msrb.mxu2 %v1335_v62 }
 0x434   :  { %1397 = vmatpush.msra.mxu2 %v1376_v43  ;;  %v1284_v52 = vpop.permute.xlu0 %1283  ;;  %v1276_v14 = vpop.permute.xlu2 %1275 }
 0x435   :  { %v1326_v21 = vsel %vm141_vm4, %v2666_v25, %v1284_v52  ;;  %v1322_v56 = vsel %vm141_vm4, %v2694_v4, %v1276_v14 }
 0x436   :  { %1615 = vmatpush.lsf.msrb.mxu2 %v1334_v33  ;;  %v1292_v63 = vpop.permute.xlu1 %1291 }
 0x437   :  { %v1330_v17 = vsel %vm141_vm4, %v1000_v48, %v1292_v63 }
 0x438   :  { %1398 = vmatpush.msra.mxu2 %v1375_v51 }
 0x43a   :  { %1616 = vmatpush.lsf.msrb.mxu2 %v1333_v45 }
 0x43c   :  { %1399 = vmatpush.msra.mxu2 %v1374_v44  ;;  %v1278_v23 = vpop.permute.xlu0 %1277 }
 0x43e   :  { %1617 = vmatpush.lsf.msrb.mxu2 %v1332_v46  ;;  %v1286_v47 = vpop.permute.xlu1 %1285 }
 0x43f   :  { %v1327_v11 = vsel %vm141_vm4, %v2499_v20, %v1286_v47  ;;  %v1323_v20 = vsel %vm141_vm4, %v2684_v59, %v1278_v23 }
 0x440   :  { %1400 = vmatpush.msra.mxu2 %v1373_v27 }
 0x442   :  { %1618 = vmatpush.lsf.msrb.mxu2 %v1331_v35 }
 0x444   :  { %1401 = vmatpush.msra.mxu2 %v1372_v18 }
 0x446   :  { %1619 = vmatpush.lsf.msrb.mxu2 %v1330_v17  ;;  %v1280_v10 = vpop.permute.xlu1 %1279 }
 0x447   :  { %v1324_v0 = vsel %vm141_vm4, %v2675_v54, %v1280_v10  ;;  %v1739_v54 = vld [vmem:[%s2884_s8] ss:$0 sm:$0xff] }
 0x448   :  { %1402 = vmatpush.msra.mxu2 %v1371_v55 }
 0x44a   :  { %1620 = vmatpush.lsf.msrb.mxu2 %v1329_v50 }
 0x44c   :  { %1403 = vmatpush.msra.mxu2 %v1370_v39 }
 0x44e   :  { %1621 = vmatpush.lsf.msrb.mxu2 %v1328_v57  ;;  %v1274_v25 = vpop.permute.xlu1 %1273 }
 0x44f   :  { %v1321_v28 = vsel %vm141_vm4, %v2701_v26, %v1274_v25 }
 0x450   :  { %1404 = vmatpush.msra.mxu2 %v1369_v60 }
 0x452   :  { %1622 = vmatpush.lsf.msrb.mxu2 %v1327_v11 }
 0x454   :  { %1623 = vmatpush.lsf.msrb.mxu2 %v1326_v21 }
 0x456   :  { %1624 = vmatpush.lsf.msrb.mxu2 %v1325_v15 }
 0x458   :  { %1625 = vmatpush.lsf.msrb.mxu2 %v1324_v0 }
 0x45a   :  { %1626 = vmatpush.lsf.msrb.mxu2 %v1323_v20 }
 0x45c   :  { %1627 = vmatpush.lsf.msrb.mxu2 %v1322_v56 }
 0x45e   :  { %1628 = vmatpush.lsf.msrb.mxu2 %v1321_v28 }
 0x45f   :  { %1629 = vllmr.1.mxu2 }
 0x480   :  { %1630 = vmatmul.lmr.bf16.vlgmr.msra.gmra.1.mxu2 }
 0x503   :  { %v1406_v59 = vpop.f32.mrf.mxu2 }
 0x504   :  { %v1407_v4 = vadd.f32 %v1739_v54, %v1406_v59 }
 0x506   :  { %1409 = vst [vmem:[#allocation2] sm:$0x3] %v1407_v4 }
 0x507   :  { %1420 = dma.vmem_to_hbm [thread:$0]  %s1416_s24, 32, %s1418_s27, [#allocation3]  }
 0x508   :  { %1798 = dma.done.wait [#allocation3], 32  }
 0x509   :  { %1799 = vsyncadd [#allocation3], 4294967264 }
 0x50a   :  { %1425 = vsyncpa [#allocation3], 1 }

</bundles_post_ra>
